<compile_context>
chip_gen: v7x
topology: tpu7x:2x2x1
jax: 0.10.0
libtpu: 0.0.40
codegen_flags: <defaults>
</compile_context>

<pallas_src>
import functools

import jax
import jax.numpy as jnp
from jax.experimental import pallas as pl
from jax.experimental.pallas import tpu as pltpu

B_COEF = 2.0   # self.b — `f = -b*x + outer` is dead code (forward returns `outer`)
R_COEF = 0.1   # self.r


def _epidemic_kernel(a_ref, x_ref, o_ref, acc_ref, *, tm, tk):
    """One (row-tile, K-tile) step of diag(A @ (r * (1 - x) @ x.T)).

    Algebraic rewrite:
        diag(A @ ((1 - x) @ x.T))[j] = sum_n sum_d A[j, n] * (1 - x[n, d]) * x[j, d]
    which is separable over column (contraction) tiles of A, so each (i, k)
    grid step does one (tm, tk) @ (tk, D) MXU matmul, an elementwise multiply
    with x rows [i*tm, i*tm+tm) and a lane-axis reduction, accumulated into a
    tiny (1, tm) f32 scratch.  No (N, N) intermediate, no x.T, and VMEM is
    O(tm*tk) — independent of N.
    """
    i = pl.program_id(0)
    k = pl.program_id(1)

    @pl.when(k == 0)
    def _init():
        acc_ref[...] = jnp.zeros_like(acc_ref)

    # Contraction tile of (1 - x): rows [k*tk, k*tk + tk) of the resident x.
    koff = pl.multiple_of(k * tk, tk)
    omx_k = 1.0 - x_ref[pl.ds(koff, tk), :]                        # (tk, D) f32

    # A is stored bf16 in HBM (halves the only O(N^2) HBM stream); the upcast
    # is exact for 0/1 adjacency and the matmul accumulates in f32, so the
    # 1e-4 tolerance vs. the f32 torch math still holds.
    a = a_ref[...].astype(jnp.float32)                             # (tm, tk)
    y = jnp.dot(a, omx_k, preferred_element_type=jnp.float32)      # (tm, D)

    # Row tile of x matching this A row block — sliced from the resident copy,
    # no separate x-tile input stream / extra double buffer / extra HBM read.
    ioff = pl.multiple_of(i * tm, tm)
    x_i = x_ref[pl.ds(ioff, tm), :]                                # (tm, D)

    acc_ref[...] += jnp.sum(y * x_i, axis=-1)[None, :]             # (1, tm)

    @pl.when(k == pl.num_programs(1) - 1)
    def _store():
        # Lane-dense (1, tm) store (tm is a multiple of 128 -> unmasked vst);
        # r folded in once at the end.
        o_ref[...] = (R_COEF * acc_ref[...]).astype(o_ref.dtype)


def _pick_tiles(n_pad: int):
    # Row tile: 512 where it still leaves >=2 row blocks (keeps the parallel
    # axis shardable across v7x's 2 TensorCores), else 256.
    tm = 512 if (n_pad % 512 == 0 and n_pad // 512 >= 2) else 256
    # Contraction tile: largest of {2048, 1024, 512, 256} dividing n_pad; long
    # A-tile DMAs, bounded VMEM.
    tk = next(t for t in (2048, 1024, 512, 256) if n_pad % t == 0)
    return tm, tk


def epidemic_dynamics(A, x, *, a_dtype=jnp.bfloat16):
    """Pallas forward of EpidemicDynamics: diag(A @ (r*(1-x) @ x.T)).reshape(-1,1).

    Grid: (row tiles of A -> "parallel", contraction tiles of A -> "arbitrary").
    Per-step VMEM = 2*tm*tk*sizeof(A) + N_pad*D*4 + small, independent of N,
    so the same tiling fits v5e/v6e (128 MiB) and v7x (64 MiB) VMEM.
    """
    N, D = x.shape
    assert A.shape == (N, N)

    # Pad N to a multiple of 256 so every block obeys the (8, 128) layout rule
    # (no masked vst.msk partial stores, no giant single-block fallback for
    # awkward/prime N).  Zero-padded rows/cols of A contribute nothing and the
    # padded diag entries are sliced off below.
    n_pad = max(256, -(-N // 256) * 256)
    tm, tk = _pick_tiles(n_pad)
    grid = (n_pad // tm, n_pad // tk)

    # bf16 A is exactly lossless for 0/1 adjacency matrices (the intended use);
    # pass a_dtype=jnp.float32 for general-valued A.  x stays f32 (tolerance).
    A_p = jnp.pad(A.astype(a_dtype), ((0, n_pad - N), (0, n_pad - N)))
    x_p = jnp.pad(x.astype(jnp.float32), ((0, n_pad - N), (0, 0)))

    a_itemsize = jnp.dtype(a_dtype).itemsize
    # Double-buffered A tile + single-buffered resident x + output + scratch,
    # with 2x headroom; clamp to [32 MiB, 48 MiB] (safe on v5e/v6e/v7x).
    footprint = 2 * tm * tk * a_itemsize + n_pad * D * 4 + 2 * tm * 4 + tm * 4
    vmem_limit = int(min(48 << 20, max(32 << 20, 2 * footprint + (4 << 20))))

    cost = pl.CostEstimate(
        flops=2 * n_pad * n_pad * D + 3 * n_pad * D,
        transcendentals=0,
        bytes_accessed=n_pad * n_pad * a_itemsize + n_pad * D * 4 + n_pad * 4,
    )

    # TODO(synk): for the real workload (N<=512 nodes, many ODE timesteps) a
    # standalone call per step is launch/DMA-overhead bound and the D=32 matmul
    # leaves the MXU lanes 4-8x under-used; batch many graphs/timesteps into one
    # call (extra leading "parallel" grid axis, or stack states along D to make
    # the RHS/output >=128 lanes wide) at the caller.
    out_lane = pl.pallas_call(
        functools.partial(_epidemic_kernel, tm=tm, tk=tk),
        grid=grid,
        in_specs=[
            # A row x column tile — the only O(N^2) stream (bf16 in HBM).
            pl.BlockSpec((tm, tk), lambda i, k: (i, k)),
            # Full x resident in VMEM; grid-invariant index map, so single-buffer
            # it (reclaims one N_pad*D*4 B buffer that double-buffering wastes).
            pl.BlockSpec((n_pad, D), lambda i, k: (0, 0),
                         pipeline_mode=pl.Buffered(1)),
        ],
        out_specs=pl.BlockSpec((1, tm), lambda i, k: (0, i)),
        out_shape=jax.ShapeDtypeStruct((1, n_pad), jnp.float32),
        scratch_shapes=[pltpu.VMEM((1, tm), jnp.float32)],
        compiler_params=pltpu.CompilerParams(
            dimension_semantics=("parallel", "arbitrary"),
            vmem_limit_bytes=vmem_limit,
        ),
        cost_estimate=cost,
    )(A_p, x_p)

    # Free layout plumbing back to the torch output shape.
    return out_lane[0, :N].reshape(N, 1)


def _reference(A, x):
    # Pure-JAX reference: identical math to the PyTorch forward (which returns
    # `outer`; the f = -b*x + outer term is dead code).
    return jnp.diag(A @ (R_COEF * ((1.0 - x) @ x.T))).reshape(-1, 1)


if __name__ == "__main__":
    key = jax.random.PRNGKey(0)
    k_a, k_x, k_a2, k_x2 = jax.random.split(key, 4)

    # Tiling-meaningful, 256-aligned case: N nodes, D-dim node state.
    N, D = 512, 32
    A = (jax.random.uniform(k_a, (N, N), dtype=jnp.float32) > 0.5).astype(jnp.float32)
    x = jax.random.uniform(k_x, (N, D), dtype=jnp.float32)

    out = epidemic_dynamics(A, x)
    jax.block_until_ready(out)
    ref = _reference(A, x)
    assert out.shape == (N, 1)
    assert jnp.allclose(out, ref, atol=1e-4, rtol=1e-4), float(jnp.max(jnp.abs(out - ref)))

    # Awkward (non-aligned) N exercises the padding path.
    N2, D2 = 200, 32
    A2 = (jax.random.uniform(k_a2, (N2, N2), dtype=jnp.float32) > 0.5).astype(jnp.float32)
    x2 = jax.random.uniform(k_x2, (N2, D2), dtype=jnp.float32)

    out2 = epidemic_dynamics(A2, x2)
    jax.block_until_ready(out2)
    ref2 = _reference(A2, x2)
    assert out2.shape == (N2, 1)
    assert jnp.allclose(out2, ref2, atol=1e-4, rtol=1e-4), float(jnp.max(jnp.abs(out2 - ref2)))

    print("KERNEL_OK")
</pallas_src>

<mosaic_0001>
module attributes {stable_mosaic.version = 11 : i64} {
  func.func @_epidemic_kernel(%arg0: i32, %arg1: i32, %arg2: memref<256x512xbf16, #tpu.memory_space<vmem>>, %arg3: memref<512x32xf32, #tpu.memory_space<vmem>>, %arg4: memref<1x256xf32, #tpu.memory_space<vmem>>, %arg5: memref<1x256xf32, #tpu.memory_space<vmem>>) attributes {dimension_semantics = [#tpu.dimension_semantics<parallel>, #tpu.dimension_semantics<arbitrary>], iteration_bounds = array<i64: 2, 1>, scalar_prefetch = 0 : i64, scratch_operands = 1 : i64, tpu.core_type = #tpu.core_type<tc>, window_params = [{transform_indices = @transform_0, window_bounds = array<i64: 256, 512>}, {pipeline_mode = #tpu.pipeline_mode<synchronous>, transform_indices = @transform_1, window_bounds = array<i64: 512, 32>}, {transform_indices = @transform_2, window_bounds = array<i64: 1, 256>}]} {
    %c0_i32 = arith.constant 0 : i32
    %0 = arith.cmpi eq, %arg1, %c0_i32 : i32
    %1 = arith.extui %0 : i1 to i32
    %c0_i32_0 = arith.constant 0 : i32
    %2 = arith.cmpi ne, %1, %c0_i32_0 : i32
    scf.if %2 {
      %cst_12 = arith.constant 0.000000e+00 : f32
      %25 = vector.broadcast %cst_12 : f32 to vector<1x256xf32>
      %c0_13 = arith.constant 0 : index
      %c0_14 = arith.constant 0 : index
      %26 = vector.load %arg5[%c0_13, %c0_14] : memref<1x256xf32, #tpu.memory_space<vmem>>, vector<1x256xf32>
      tpu.vector_store %arg5[%c0_13, %c0_14], %25 {strides = array<i32>} : memref<1x256xf32, #tpu.memory_space<vmem>>, vector<1x256xf32>,
    } else {
    }
    %c512_i32 = arith.constant 512 : i32
    %3 = arith.muli %arg1, %c512_i32 : i32
    %4 = tpu.assume_multiple %3, 512 : i32
    %5 = arith.index_cast %4 : i32 to index
    %c0 = arith.constant 0 : index
    %6 = vector.load %arg3[%5, %c0] : memref<512x32xf32, #tpu.memory_space<vmem>>, vector<512x32xf32>
    %cst = arith.constant 1.000000e+00 : f32
    %7 = vector.broadcast %cst : f32 to vector<512x32xf32>
    %8 = arith.subf %7, %6 : vector<512x32xf32>
    %c0_1 = arith.constant 0 : index
    %c0_2 = arith.constant 0 : index
    %9 = vector.load %arg2[%c0_1, %c0_2] : memref<256x512xbf16, #tpu.memory_space<vmem>>, vector<256x512xbf16>
    %10 = arith.extf %9 : vector<256x512xbf16> to vector<256x512xf32>
    %cst_3 = arith.constant dense<0.000000e+00> : vector<256x32xf32>
    %11 = tpu.matmul %10, %8, %cst_3 {dimension_numbers = #tpu.dot_dimension_numbers<[1], [0], [0], [1], [0, 0, 1, 1], [], []>} : vector<256x512xf32>, vector<512x32xf32>, vector<256x32xf32> -> vector<256x32xf32>
    %c256_i32 = arith.constant 256 : i32
    %12 = arith.muli %arg0, %c256_i32 : i32
    %13 = tpu.assume_multiple %12, 256 : i32
    %14 = arith.index_cast %13 : i32 to index
    %c0_4 = arith.constant 0 : index
    %15 = vector.load %arg3[%14, %c0_4] : memref<512x32xf32, #tpu.memory_space<vmem>>, vector<256x32xf32>
    %c0_5 = arith.constant 0 : index
    %c0_6 = arith.constant 0 : index
    %16 = vector.load %arg5[%c0_5, %c0_6] : memref<1x256xf32, #tpu.memory_space<vmem>>, vector<1x256xf32>
    %17 = arith.mulf %11, %15 : vector<256x32xf32>
    %cst_7 = arith.constant dense<0.000000e+00> : vector<256xf32>
    %18 = vector.multi_reduction <add>, %17, %cst_7 [1] : vector<256x32xf32> to vector<256xf32>
    %19 = vector.shape_cast %18 : vector<256xf32> to vector<1x256xf32>
    %20 = arith.addf %16, %19 : vector<1x256xf32>
    %c0_8 = arith.constant 0 : index
    %c0_9 = arith.constant 0 : index
    %21 = vector.load %arg5[%c0_8, %c0_9] : memref<1x256xf32, #tpu.memory_space<vmem>>, vector<1x256xf32>
    tpu.vector_store %arg5[%c0_8, %c0_9], %20 {strides = array<i32>} : memref<1x256xf32, #tpu.memory_space<vmem>>, vector<1x256xf32>,
    %c0_i32_10 = arith.constant 0 : i32
    %22 = arith.cmpi eq, %arg1, %c0_i32_10 : i32
    %23 = arith.extui %22 : i1 to i32
    %c0_i32_11 = arith.constant 0 : i32
    %24 = arith.cmpi ne, %23, %c0_i32_11 : i32
    scf.if %24 {
      %c0_12 = arith.constant 0 : index
      %c0_13 = arith.constant 0 : index
      %25 = vector.load %arg5[%c0_12, %c0_13] : memref<1x256xf32, #tpu.memory_space<vmem>>, vector<1x256xf32>
      %cst_14 = arith.constant 1.000000e-01 : f32
      %26 = vector.broadcast %cst_14 : f32 to vector<1x256xf32>
      %27 = arith.mulf %26, %25 : vector<1x256xf32>
      %c0_15 = arith.constant 0 : index
      %c0_16 = arith.constant 0 : index
      %28 = vector.load %arg4[%c0_15, %c0_16] : memref<1x256xf32, #tpu.memory_space<vmem>>, vector<1x256xf32>
      tpu.vector_store %arg4[%c0_15, %c0_16], %27 {strides = array<i32>} : memref<1x256xf32, #tpu.memory_space<vmem>>, vector<1x256xf32>,
    } else {
    }
    return
  }
  func.func @transform_0(%arg0: i32, %arg1: i32) -> (i32, i32) {
    %c0_i32 = arith.constant 0 : i32
    return %arg0, %arg1 : i32, i32
  }
  func.func @transform_1(%arg0: i32, %arg1: i32) -> (i32, i32) {
    %c0_i32 = arith.constant 0 : i32
    %c0_i32_0 = arith.constant 0 : i32
    %c0_i32_1 = arith.constant 0 : i32
    return %c0_i32, %c0_i32_0 : i32, i32
  }
  func.func @transform_2(%arg0: i32, %arg1: i32) -> (i32, i32) {
    %c0_i32 = arith.constant 0 : i32
    %c0_i32_0 = arith.constant 0 : i32
    return %c0_i32, %arg0 : i32, i32
  }
}

</mosaic_0001>

<bundles_post_ra>
// kernel: tpu_custom_call.1
= control target key start
LH: loop header
LB: loop body
LE: loop exit
PB: predicated region body
PF: predicated region fallthrough
CT: control target
= control target key end

     0   :  { %7 = vsyncpa [#allocation4], 0  ;;  %s5717_s0 = inlined_call_operand.hbm [shape: bf16[512,512], index: 0, kind: input, shape index: {}]   ;;  %s5718_s1 = inlined_call_operand.vmem [shape: f32[512,32], index: 1, kind: input, shape index: {}]   ;;  %s5719_s2 = inlined_call_operand.hbm [shape: f32[1,512], index: 2, kind: output, shape index: {}]  }
   0x1   :  { %9 = vsyncpa [#allocation4 + $0x1], 0 }
   0x2   :  { %10 = vsyncpa [#allocation5], 0 }
   0x3   :  { %12 = vsyncpa [#allocation5 + $0x1], 0  ;;  %s4520_s9 = smov 0   ;;  %s4522_s10 = smov 0  }
   0x4   :  { %s4524_s11 = smov 0   ;;  %s4526_s12 = smov 0  }
   0x5   :  { %s4528_s13 = smov 0   ;;  %s4530_s14 = smov 0  }
   0x6 LB: > { %s4165_s15 = sadd.s32 4294967295, %s4495_s14   ;;  %s4166_s16 = sadd.s32 4294967294, %s4495_s14   ;;  %s4495_s14 = sphi %s4530_s14, %s18_s14   ;;  %s4491_s13 = sphi %s4528_s13, %s5736_s13   ;;  %s4487_s12 = sphi %s4526_s12, %s5735_s12   ;;  %s4483_s11 = sphi %s4524_s11, %s5734_s11   ;;  %s4479_s10 = sphi %s4522_s10, %s5733_s10   ;;  %s4475_s9 = sphi %s4520_s9, %s5732_s9  }
   0x7   : > { %s30_s17 = sadd.s32 1, %s4491_s13  ;;  %s39_s18 = sadd.s32 1, %s4483_s11 }
   0x8   : > { %p32_p0 = scmp.ge.s32.totalorder %s30_s17, 2  ;;  %p46_p1 = scmp.ne.s32.totalorder %s4483_s11, %s4479_s10 }
   0x9   : > { %p47_p2 = scmp.eq.s32.totalorder %s4495_s14, 0  ;;  %p52_p3 = scmp.ne.s32.totalorder %s4479_s10, %s4475_s9 }
   0xa   : > { %s5738_s17 = smov (%p32_p0, %s30_s17), 0  ;;  %p53_p5 = scmp.eq.s32.totalorder %s4165_s15, 0 }
   0xb   : > { %p4561_p4 = por %p47_p2, %p46_p1  ;;  %s34_s20 = ssub.s32 %s4491_s13, %s5738_s17 }
   0xc   : > { %p97_p6 = scmp.eq.s32.totalorder %s4165_s15, 1  ;;  %p37_p7 = scmp.eq.s32.totalorder %s34_s20, 0 }
   0xd   : > { %p4567_p8 = por %p53_p5, %p52_p3  ;;  %p103_p10 = scmp.eq.s32.totalorder %s4166_s16, 1 }
   0xe   : > { %p4571_p9 = por %p97_p6, %p46_p1  ;;  %p4325_p13 = scmp.lt.s32.totalorder %s4495_s14, 2 }
   0xf   : > { %s4576_s23 = scalar_select %p37_p7, %s4483_s11, %s39_s18  }
  0x10   : > { %s5723_s22 = scalar_select %p4571_p9, 1, 0 }
  0x11   : > { %p4578_p11 = por %p103_p10, %p52_p3  ;;  %s126_s25 = sand.u32 1, %s4483_s11  }
  0x12   : > { %s4169_s26 = sshll.u32 %s126_s25, 9  ;;  %s4183_s27 = sshll.u32 %s4491_s13, 13 }
  0x13   : > { %s5724_s24 = scalar_select %p4578_p11, 1, 0 }
  0x14   : > { %s4589_s30 = scalar_lea.hbm %s5717_s0, %s4183_s27  ;;  %s130_s3 = scalar_lea.vmem [#allocation3], %s4169_s26 }
  0x15   : > { %s140_s4 = sshll.u32 %s130_s3, 4  ;;  %p4595_p0 = pnand %p4325_p13, %p4561_p4  ;;  %s4591_s4 = int_to_ptr.vmem [resolvable:$true] %s140_s4 }
  0x16   : > { %s4600_s6 = scalar_lea.sflag [#allocation4], %s126_s25  ;;  %s4383_s7 = scalar_lea.hbm %s4589_s30, 8192 }
  0x17   : > { %p4384_p2 = scmp.ne.s32.totalorder %s4589_s30, %s4383_s7  ;;  %p4385_p3 = pneg %p4595_p0 }
  0x18   : > { %s4388_s16 = scalar_lea.hbm %s5717_s0, 16384  ;;  %p4389_p4 = scmp.lt.u32.totalorder %s4589_s30, %s5717_s0 }
  0x19   : > { %p4386_p5 = pnand %p4385_p3, %p4384_p2  ;;  %p4390_p7 = scmp.lt.u32.totalorder %s4388_s16, %s4383_s7 }
  0x1a   : > { %p4392_p13 = scmp.lt.u32.totalorder %s4383_s7, %s4589_s30 }
  0x1b   : > { %p4387_p6 = pneg %p4386_p5  ;;  %p4391_p10 = por %p4390_p7, %p4389_p4 }
  0x1d   : > { %p4393_p12 = por %p4392_p13, %p4391_p10 }
  0x1f   : > { %p4394_p1 = pnand %p4393_p12, %p4387_p6 }
  0x21   : > { %4397 = shalt.err (!%p4394_p1)
}
  0x22   : > { %s4398_s20 = scalar_lea.vmem %s4591_s4, 8192  ;;  %s4497_s25 = smov [#allocation3]  }
  0x23   : > { %p4399_p2 = scmp.ne.s32.totalorder %s4591_s4, %s4398_s20  ;;  %s4403_s26 = sshll.u32 %s4497_s25, 4  ;;  %s4404_s26 = int_to_ptr.vmem [resolvable:$false] %s4403_s26 }
  0x24   : > { %s4405_s27 = scalar_lea.vmem %s4404_s26, 16384  ;;  %p4406_p9 = scmp.lt.s32.totalorder %s4591_s4, %s4404_s26 }
  0x25   : > { %p4401_p5 = pnand %p4399_p2, %p4385_p3  ;;  %p4407_p4 = scmp.lt.s32.totalorder %s4405_s27, %s4398_s20 }
  0x27   : > { %p4402_p11 = pneg %p4401_p5  ;;  %p4408_p7 = por %p4407_p4, %p4406_p9 }
  0x29   : > { %p4409_p10 = pnand %p4408_p7, %p4402_p11 }
  0x2b   : > { %4412 = shalt.err (!%p4409_p10)
}
  0x2c   : > { %s4498_s28 = smov 256   ;;  %s4499_s29 = smov 16  }
  0x2d   : > { %4320 = dma.hbm_to_vmem [thread:$0]  (!%p4595_p0), %s4589_s30, 8192, %s4591_s4, %s4600_s6, %s4498_s28, %s4498_s28, %s4499_s29  }
  0x2e   : > { %p148_p12 = scmp.lt.s32.totalorder %s4495_s14, 3  ;;  %p5726_p1 = scmp.ge.s32.totalorder %s4495_s14, 1 }
  0x30   : > { %p149_p3 = pnand %p5726_p1, %p148_p12 }
  0x31   : > { %s4632_s3 = sand.u32 (!%p149_p3), 1, %s4479_s10  }
  0x32   : > { %152 = sbr.rel (%p149_p3) target bundleno = 825 (0x339), region = 28  ;;  %s4174_s7 = sshll.u32 (!%p149_p3), %s4632_s3, 9 }
  0x33   : > { %s155_s8 = scalar_lea.sflag (!%p149_p3), [#allocation4], %s4632_s3  ;;  %s4636_s15 = scalar_lea.vmem (!%p149_p3), [#allocation3], %s4174_s7 }
  0x39   : > { %4466 = dma.done.wait (%p4567_p8), %s155_s8, 8192  }
  0x3a   : > { %4468 = vsyncadd (%p4567_p8), %s155_s8, 4294959104  ;;  %v4500_v0 = vmov 0.0|0.0   ;;  %v193_v1 = vld [vmem:[%s5718_s1] sm:$0xff]  ;;  %v194_v2 = vld [vmem:[%s5718_s1 + $0x8] sm:$0xff]  ;;  %s4176_s30 = sshll.u32 %s4487_s12, 8  ;;  %vm1030_vm0 = vcmask 261120  }
  0x3b   : > { %4185 = vmatprep.subr.bf16.mxu1 %v4500_v0  ;;  %4233 = vmatprep.subr.bf16.mxu0 %v4500_v0  ;;  %v225_v3 = vld [vmem:[%s5718_s1 + $0x100] sm:$0xff]  ;;  %v257_v4 = vsub.f32 1.0, %v193_v1  ;;  %v258_v5 = vsub.f32 1.0, %v194_v2  ;;  %v226_v6 = vld [vmem:[%s5718_s1 + $0x108] sm:$0xff]  ;;  %v195_v8 = vld [vmem:[%s5718_s1 + $0x10] sm:$0xff]  ;;  %s4942_s5 = scalar_lea.vmem %s5718_s1, %s4176_s30  ;;  %vm3858_vm2 = vcmask 130112  }
  0x3c   : > { %v289_v7 = vsub.f32 1.0, %v225_v3  ;;  %v196_v9 = vld [vmem:[%s5718_s1 + $0x18] sm:$0xff]  ;;  %v290_v10 = vsub.f32 1.0, %v226_v6  ;;  %v259_v11 = vsub.f32 1.0, %v195_v8  ;;  %v227_v13 = vld [vmem:[%s5718_s1 + $0x110] sm:$0xff]  ;;  %v197_v15 = vld [vmem:[%s5718_s1 + $0x20] sm:$0xff] }
  0x3d   : > { %v260_v12 = vsub.f32 1.0, %v196_v9  ;;  %v228_v14 = vld [vmem:[%s5718_s1 + $0x118] sm:$0xff]  ;;  %v4186_v16 = vpack.c.bf16 %v258_v5, %v257_v4  ;;  %v291_v17 = vsub.f32 1.0, %v227_v13  ;;  %v198_v19 = vld [vmem:[%s5718_s1 + $0x28] sm:$0xff]  ;;  %v229_v20 = vld [vmem:[%s5718_s1 + $0x120] sm:$0xff]  ;;  %v261_v24 = vsub.f32 1.0, %v197_v15 }
  0x3e   : > { %v292_v18 = vsub.f32 1.0, %v228_v14  ;;  %v230_v21 = vld [vmem:[%s5718_s1 + $0x128] sm:$0xff]  ;;  %v4234_v22 = vpack.c.bf16 %v290_v10, %v289_v7  ;;  %v262_v25 = vsub.f32 1.0, %v198_v19  ;;  %v293_v27 = vsub.f32 1.0, %v229_v20  ;;  %v199_v29 = vld [vmem:[%s5718_s1 + $0x30] sm:$0xff]  ;;  %v200_v30 = vld [vmem:[%s5718_s1 + $0x38] sm:$0xff] }
  0x3f   : > { %4187 = vmatpush1.bf16.msra.mxu1 %v4186_v16  ;;  %v4189_v23 = vpack.c.bf16 %v260_v12, %v259_v11  ;;  %v294_v28 = vsub.f32 1.0, %v230_v21  ;;  %v231_v31 = vld [vmem:[%s5718_s1 + $0x130] sm:$0xff]  ;;  %v232_v32 = vld [vmem:[%s5718_s1 + $0x138] sm:$0xff]  ;;  %v263_v34 = vsub.f32 1.0, %v199_v29  ;;  %v264_v35 = vsub.f32 1.0, %v200_v30  ;;  %v201_v39 = vld [vmem:[%s5718_s1 + $0x40] sm:$0xff] }
  0x40   : > { %4235 = vmatpush1.bf16.msra.mxu0 %v4234_v22  ;;  %4188 = vmatprep.subr.bf16.mxu1 %v4500_v0  ;;  %v4237_v26 = vpack.c.bf16 %v292_v18, %v291_v17  ;;  %v4192_v33 = vpack.c.bf16 %v262_v25, %v261_v24  ;;  %v295_v37 = vsub.f32 1.0, %v231_v31  ;;  %v296_v38 = vsub.f32 1.0, %v232_v32  ;;  %v202_v40 = vld [vmem:[%s5718_s1 + $0x48] sm:$0xff]  ;;  %v233_v41 = vld [vmem:[%s5718_s1 + $0x140] sm:$0xff]  ;;  %v203_v49 = vld [vmem:[%s5718_s1 + $0x50] sm:$0xff]  ;;  %s4175_s6 = sshll.u32 %s4632_s3, 1 }
  0x41   : > { %4236 = vmatprep.subr.bf16.mxu0 %v4500_v0  ;;  %v4240_v36 = vpack.c.bf16 %v294_v28, %v293_v27  ;;  %v234_v42 = vld [vmem:[%s5718_s1 + $0x148] sm:$0xff]  ;;  %v4195_v43 = vpack.c.bf16 %v264_v35, %v263_v34  ;;  %v265_v44 = vsub.f32 1.0, %v201_v39  ;;  %v266_v45 = vsub.f32 1.0, %v202_v40  ;;  %v204_v50 = vld [vmem:[%s5718_s1 + $0x58] sm:$0xff]  ;;  %v235_v51 = vld [vmem:[%s5718_s1 + $0x150] sm:$0xff]  ;;  %s4184_s16 = sshll.u32 %s4487_s12, 5 }
  0x42   : > { %v4243_v46 = vpack.c.bf16 %v296_v38, %v295_v37  ;;  %v297_v47 = vsub.f32 1.0, %v233_v41  ;;  %v298_v48 = vsub.f32 1.0, %v234_v42  ;;  %v236_v52 = vld [vmem:[%s5718_s1 + $0x158] sm:$0xff]  ;;  %v267_v54 = vsub.f32 1.0, %v203_v49  ;;  %v205_v59 = vld [vmem:[%s5718_s1 + $0x60] sm:$0xff]  ;;  %v206_v60 = vld [vmem:[%s5718_s1 + $0x68] sm:$0xff]  ;;  %s5666_s25 = scalar_lea.hbm %s5719_s2, %s4184_s16 }
  0x43   : > { %4190 = vmatpush1.bf16.msra.mxu1 %v4189_v23  ;;  %v4198_v53 = vpack.c.bf16 %v266_v45, %v265_v44  ;;  %v268_v55 = vsub.f32 1.0, %v204_v50  ;;  %v299_v57 = vsub.f32 1.0, %v235_v51  ;;  %v300_v58 = vsub.f32 1.0, %v236_v52  ;;  %v237_v61 = vld [vmem:[%s5718_s1 + $0x160] sm:$0xff]  ;;  %v238_v62 = vld [vmem:[%s5718_s1 + $0x168] sm:$0xff]  ;;  %v207_v6 = vld [vmem:[%s5718_s1 + $0x70] sm:$0xff] }
  0x44   : > { %4238 = vmatpush1.bf16.msra.mxu0 %v4237_v26  ;;  %4191 = vmatprep.subr.bf16.mxu1 %v4500_v0  ;;  %v4246_v56 = vpack.c.bf16 %v298_v48, %v297_v47  ;;  %v269_v1 = vsub.f32 1.0, %v205_v59  ;;  %v270_v2 = vsub.f32 1.0, %v206_v60  ;;  %v301_v4 = vsub.f32 1.0, %v237_v61  ;;  %v208_v7 = vld [vmem:[%s5718_s1 + $0x78] sm:$0xff]  ;;  %v4744_v8 = vld [vmem:[%s4636_s15] sm:$0xff]  ;;  %v239_v9 = vld [vmem:[%s5718_s1 + $0x170] sm:$0xff] }
  0x45   : > { %4239 = vmatprep.subr.bf16.mxu0 %v4500_v0  ;;  %v4201_v63 = vpack.c.bf16 %v268_v55, %v267_v54  ;;  %v4249_v3 = vpack.c.bf16 %v300_v58, %v299_v57  ;;  %v302_v5 = vsub.f32 1.0, %v238_v62  ;;  %v240_v10 = vld [vmem:[%s5718_s1 + $0x178] sm:$0xff]  ;;  %v4754_v11 = vld [vmem:[%s4636_s15 + $0x8] sm:$0xff]  ;;  %v271_v13 = vsub.f32 1.0, %v207_v6  ;;  %v209_v19 = vld [vmem:[%s5718_s1 + $0x80] sm:$0xff]  ;;  %s178_s18 = scalar_lea.vmem [#allocation6], %s4175_s6 }
  0x46   : > { %v4204_v12 = vpack.c.bf16 %v270_v2, %v269_v1  ;;  %v272_v14 = vsub.f32 1.0, %v208_v7  ;;  %v386_v15 = vunpack.c.h.bf16 %v4744_v8  ;;  %v303_v17 = vsub.f32 1.0, %v239_v9  ;;  %v210_v20 = vld [vmem:[%s5718_s1 + $0x88] sm:$0xff]  ;;  %v241_v22 = vld [vmem:[%s5718_s1 + $0x180] sm:$0xff]  ;;  %v211_v30 = vld [vmem:[%s5718_s1 + $0x90] sm:$0xff]  ;;  %s4080_s21 = sshll.u32 %s178_s18, 4  ;;  %s5668_s21 = int_to_ptr.vmem [resolvable:$true] %s4080_s21 }
  0x47   : > { %4193 = vmatpush1.bf16.msra.mxu1 %v4192_v33  ;;  %v4252_v16 = vpack.c.bf16 %v302_v5, %v301_v4  ;;  %v304_v18 = vsub.f32 1.0, %v240_v10  ;;  %v388_v21 = vunpack.c.h.bf16 %v4754_v11  ;;  %v242_v23 = vld [vmem:[%s5718_s1 + $0x188] sm:$0xff]  ;;  %v273_v25 = vsub.f32 1.0, %v209_v19  ;;  %v212_v31 = vld [vmem:[%s5718_s1 + $0x98] sm:$0xff]  ;;  %v243_v32 = vld [vmem:[%s5718_s1 + $0x190] sm:$0xff]  ;;  %s4066_s26 = scalar_lea.sflag [#allocation5], %s4632_s3 }
  0x48   : > { %4241 = vmatpush1.bf16.msra.mxu0 %v4240_v36  ;;  %4194 = vmatprep.subr.bf16.mxu1 %v4500_v0  ;;  %v4207_v24 = vpack.c.bf16 %v272_v14, %v271_v13  ;;  %v274_v26 = vsub.f32 1.0, %v210_v20  ;;  %v305_v28 = vsub.f32 1.0, %v241_v22  ;;  %v306_v29 = vsub.f32 1.0, %v242_v23  ;;  %v244_v33 = vld [vmem:[%s5718_s1 + $0x198] sm:$0xff]  ;;  %v213_v40 = vld [vmem:[%s5718_s1 + $0xa0] sm:$0xff]  ;;  %v214_v41 = vld [vmem:[%s5718_s1 + $0xa8] sm:$0xff] }
  0x49   : > { %4242 = vmatprep.subr.bf16.mxu0 %v4500_v0  ;;  %577 = vmatprep.mubr.f32.mxu1 %v386_v15  ;;  %v4255_v27 = vpack.c.bf16 %v304_v18, %v303_v17  ;;  %v275_v35 = vsub.f32 1.0, %v211_v30  ;;  %v276_v36 = vsub.f32 1.0, %v212_v31  ;;  %v307_v38 = vsub.f32 1.0, %v243_v32  ;;  %v245_v42 = vld [vmem:[%s5718_s1 + $0x1a0] sm:$0xff]  ;;  %v215_v50 = vld [vmem:[%s5718_s1 + $0xb0] sm:$0xff]  ;;  %v216_v51 = vld [vmem:[%s5718_s1 + $0xb8] sm:$0xff] }
  0x4a   : > { %802 = vmatprep.mubr.f32.mxu0 %v388_v21  ;;  %v4210_v34 = vpack.c.bf16 %v274_v26, %v273_v25  ;;  %v4258_v37 = vpack.c.bf16 %v306_v29, %v305_v28  ;;  %v308_v39 = vsub.f32 1.0, %v244_v33  ;;  %v277_v45 = vsub.f32 1.0, %v213_v40  ;;  %v247_v52 = vld [vmem:[%s5718_s1 + $0x1b0] sm:$0xff]  ;;  %v217_v60 = vld [vmem:[%s5718_s1 + $0xc0] sm:$0xff]  ;;  %v218_v61 = vld [vmem:[%s5718_s1 + $0xc8] sm:$0xff]  ;;  %s4413_s27 = scalar_lea.vmem %s5668_s21, 32 }
  0x4b   : > { %4196 = vmatpush1.bf16.msra.mxu1 %v4195_v43  ;;  %v246_v43 = vld [vmem:[%s5718_s1 + $0x1a8] sm:$0xff]  ;;  %v4213_v44 = vpack.c.bf16 %v276_v36, %v275_v35  ;;  %v309_v48 = vsub.f32 1.0, %v245_v42  ;;  %v279_v55 = vsub.f32 1.0, %v215_v50  ;;  %v311_v58 = vsub.f32 1.0, %v247_v52  ;;  %v249_v62 = vld [vmem:[%s5718_s1 + $0x1c0] sm:$0xff]  ;;  %v219_v7 = vld [vmem:[%s5718_s1 + $0xd0] sm:$0xff]  ;;  %p4414_p8 = scmp.ne.s32.totalorder %s5668_s21, %s4413_s27 }
  0x4c   : > { %4244 = vmatpush1.bf16.msra.mxu0 %v4243_v46  ;;  %4197 = vmatprep.subr.bf16.mxu1 %v4500_v0  ;;  %v278_v46 = vsub.f32 1.0, %v214_v41  ;;  %v4261_v47 = vpack.c.bf16 %v308_v39, %v307_v38  ;;  %v310_v49 = vsub.f32 1.0, %v246_v43  ;;  %v281_v2 = vsub.f32 1.0, %v217_v60  ;;  %v220_v9 = vld [vmem:[%s5718_s1 + $0xd8] sm:$0xff]  ;;  %v251_v10 = vld [vmem:[%s5718_s1 + $0x1d0] sm:$0xff]  ;;  %v221_v19 = vld [vmem:[%s5718_s1 + $0xe0] sm:$0xff] }
  0x4d   : > { %4245 = vmatprep.subr.bf16.mxu0 %v4500_v0  ;;  %v313_v5 = vsub.f32 1.0, %v249_v62  ;;  %v283_v14 = vsub.f32 1.0, %v219_v7  ;;  %v284_v15 = vsub.f32 1.0, %v220_v9  ;;  %v315_v17 = vsub.f32 1.0, %v251_v10  ;;  %v222_v20 = vld [vmem:[%s5718_s1 + $0xe8] sm:$0xff]  ;;  %v253_v21 = vld [vmem:[%s5718_s1 + $0x1e0] sm:$0xff] }
  0x4e   : > { %v4216_v54 = vpack.c.bf16 %v278_v46, %v277_v45  ;;  %v4264_v57 = vpack.c.bf16 %v310_v49, %v309_v48  ;;  %v254_v22 = vld [vmem:[%s5718_s1 + $0x1e8] sm:$0xff]  ;;  %v286_v25 = vsub.f32 1.0, %v222_v20  ;;  %v223_v29 = vld [vmem:[%s5718_s1 + $0xf0] sm:$0xff]  ;;  %v224_v30 = vld [vmem:[%s5718_s1 + $0xf8] sm:$0xff]  ;;  %v385_v43 = vunpack.c.l.bf16 %v4744_v8  ;;  %p5729_p9 = scmp.ne.s32.totalorder %s5723_s22, 0  ;;  %s4504_s12 = smov [#allocation6]  }
  0x4f   : > { %4199 = vmatpush1.bf16.msra.mxu1 %v4198_v53  ;;  %v248_v53 = vld [vmem:[%s5718_s1 + $0x1b8] sm:$0xff]  ;;  %v4225_v23 = vpack.c.bf16 %v284_v15, %v283_v14  ;;  %v318_v28 = vsub.f32 1.0, %v254_v22  ;;  %v255_v31 = vld [vmem:[%s5718_s1 + $0x1f0] sm:$0xff]  ;;  %v288_v35 = vsub.f32 1.0, %v224_v30  ;;  %vm3865_vm3 = vcmask 195712   ;;  %s4417_s28 = sshll.u32 %s4504_s12, 4  ;;  %s4418_s28 = int_to_ptr.vmem [resolvable:$false] %s4417_s28 }
  0x50   : > { %4247 = vmatpush1.bf16.msra.mxu0 %v4246_v56  ;;  %4200 = vmatprep.subr.bf16.mxu1 %v4500_v0  ;;  %v280_v56 = vsub.f32 1.0, %v216_v51  ;;  %v312_v59 = vsub.f32 1.0, %v248_v53  ;;  %v256_v32 = vld [vmem:[%s5718_s1 + $0x1f8] sm:$0xff]  ;;  %v326_v48 = vld [vmem:[%s4636_s15 + $0x28] sm:$0xff]  ;;  %vm3872_vm4 = vcmask 261312   ;;  %vm3879_vm5 = vcmask 326912   ;;  %p4415_p11 = pnand %p4414_p8, %p5729_p9  ;;  %p4420_p6 = scmp.lt.s32.totalorder %s5668_s21, %s4418_s28 }
  0x51   : > { %4248 = vmatprep.subr.bf16.mxu0 %v4500_v0  ;;  %v320_v38 = vsub.f32 1.0, %v256_v32  ;;  %v323_v41 = vld [vmem:[%s4636_s15 + $0x10] sm:$0xff]  ;;  %v324_v42 = vld [vmem:[%s4636_s15 + $0x18] sm:$0xff]  ;;  %v396_v8 = vunpack.c.h.bf16 %v326_v48  ;;  %v338_v20 = vld [vmem:[%s4636_s15 + $0x88] sm:$0xff]  ;;  %vm3886_vm6 = vcmask 392512   ;;  %vm3893_vm7 = vcmask 458112  }
  0x52   : > { %v4219_v1 = vpack.c.bf16 %v280_v56, %v279_v55  ;;  %v4267_v4 = vpack.c.bf16 %v312_v59, %v311_v58  ;;  %v390_v45 = vunpack.c.h.bf16 %v323_v41  ;;  %v392_v46 = vunpack.c.h.bf16 %v324_v42  ;;  %v327_v51 = vld [vmem:[%s4636_s15 + $0x30] sm:$0xff]  ;;  %v328_v52 = vld [vmem:[%s4636_s15 + $0x38] sm:$0xff]  ;;  %v329_v56 = vld [vmem:[%s4636_s15 + $0x40] sm:$0xff]  ;;  %p4416_p0 = pneg %p4415_p11  ;;  %s4419_s29 = scalar_lea.vmem %s4418_s28, 64 }
  0x53   : > { %4202 = vmatpush1.bf16.msra.mxu1 %v4201_v63  ;;  %v250_v63 = vld [vmem:[%s5718_s1 + $0x1c8] sm:$0xff]  ;;  %v389_v49 = vunpack.c.l.bf16 %v323_v41  ;;  %v400_v55 = vunpack.c.h.bf16 %v328_v52  ;;  %v397_v58 = vunpack.c.l.bf16 %v327_v51  ;;  %v399_v59 = vunpack.c.l.bf16 %v328_v52  ;;  %v331_v62 = vld [vmem:[%s4636_s15 + $0x50] sm:$0xff]  ;;  %v336_v14 = vld [vmem:[%s4636_s15 + $0x78] sm:$0xff]  ;;  %p4421_p13 = scmp.lt.s32.totalorder %s4419_s29, %s4413_s27 }
  0x54   : > { %4250 = vmatpush1.bf16.msra.mxu0 %v4249_v3  ;;  %4203 = vmatprep.subr.bf16.mxu1 %v4500_v0  ;;  %v282_v3 = vsub.f32 1.0, %v218_v61  ;;  %v314_v6 = vsub.f32 1.0, %v250_v63  ;;  %v402_v60 = vunpack.c.h.bf16 %v329_v56  ;;  %v332_v63 = vld [vmem:[%s4636_s15 + $0x58] sm:$0xff]  ;;  %v405_v7 = vunpack.c.l.bf16 %v331_v62  ;;  %v342_v32 = vld [vmem:[%s4636_s15 + $0xa8] sm:$0xff] }
  0x55   : > { %4251 = vmatprep.subr.bf16.mxu0 %v4500_v0  ;;  %v407_v9 = vunpack.c.l.bf16 %v332_v63  ;;  %v415_v22 = vunpack.c.l.bf16 %v336_v14  ;;  %vm3900_vm8 = vcmask 523712   ;;  %vm3907_vm9 = vcmask 589312   ;;  %p4422_p2 = por %p4421_p13, %p4420_p6 }
  0x56   : > { %v4222_v13 = vpack.c.bf16 %v282_v3, %v281_v2  ;;  %v406_v3 = vunpack.c.h.bf16 %v331_v62  ;;  %vm3914_vm10 = vcmask 654912   ;;  %vm3921_vm11 = vcmask 720512  }
  0x57   : > { %4205 = vmatpush1.bf16.msra.mxu1 %v4204_v12  ;;  %v252_v12 = vld [vmem:[%s5718_s1 + $0x1d8] sm:$0xff]  ;;  %vm3928_vm12 = vcmask 786112   ;;  %vm3935_vm13 = vcmask 851712   ;;  %vm3942_vm14 = vcmask 917312   ;;  %vm3949_vm15 = vcmask 982912   ;;  %p4423_p5 = pnand %p4422_p2, %p4416_p0 }
  0x58   : > { %4253 = vmatpush1.bf16.msra.mxu0 %v4252_v16  ;;  %4206 = vmatprep.subr.bf16.mxu1 %v4500_v0  ;;  %v4270_v16 = vpack.c.bf16 %v314_v6, %v313_v5  ;;  %v316_v18 = vsub.f32 1.0, %v252_v12  ;;  %v333_v5 = vld [vmem:[%s4636_s15 + $0x60] sm:$0xff]  ;;  %v334_v6 = vld [vmem:[%s4636_s15 + $0x68] sm:$0xff] }
  0x59   : > { %4254 = vmatprep.subr.bf16.mxu0 %v4500_v0  ;;  %v410_v10 = vunpack.c.h.bf16 %v333_v5  ;;  %v412_v12 = vunpack.c.h.bf16 %v334_v6  ;;  %v409_v15 = vunpack.c.l.bf16 %v333_v5 }
  0x5a   : > { %v4273_v26 = vpack.c.bf16 %v316_v18, %v315_v17  ;;  %v416_v18 = vunpack.c.h.bf16 %v336_v14 }
  0x5b   : > { %4208 = vmatpush1.bf16.msra.mxu1 %v4207_v24  ;;  %v285_v24 = vsub.f32 1.0, %v221_v19  ;;  %v337_v19 = vld [vmem:[%s4636_s15 + $0x80] sm:$0xff] }
  0x5c   : > { %4256 = vmatpush1.bf16.msra.mxu0 %v4255_v27  ;;  %4209 = vmatprep.subr.bf16.mxu1 %v4500_v0  ;;  %v317_v27 = vsub.f32 1.0, %v253_v21 }
  0x5d   : > { %4257 = vmatprep.subr.bf16.mxu0 %v4500_v0  ;;  %v4228_v33 = vpack.c.bf16 %v286_v25, %v285_v24  ;;  %v420_v24 = vunpack.c.h.bf16 %v338_v20  ;;  %v339_v25 = vld [vmem:[%s4636_s15 + $0x90] sm:$0xff] }
  0x5e   : > { %v4276_v36 = vpack.c.bf16 %v318_v28, %v317_v27  ;;  %v417_v27 = vunpack.c.l.bf16 %v337_v19  ;;  %v419_v28 = vunpack.c.l.bf16 %v338_v20 }
  0x5f   : > { %4211 = vmatpush1.bf16.msra.mxu1 %v4210_v34  ;;  %v287_v34 = vsub.f32 1.0, %v223_v29  ;;  %v422_v29 = vunpack.c.h.bf16 %v339_v25 }
  0x60   : > { %4259 = vmatpush1.bf16.msra.mxu0 %v4258_v37  ;;  %4212 = vmatprep.subr.bf16.mxu1 %v4500_v0  ;;  %v319_v37 = vsub.f32 1.0, %v255_v31  ;;  %v341_v31 = vld [vmem:[%s4636_s15 + $0xa0] sm:$0xff] }
  0x61   : > { %4260 = vmatprep.subr.bf16.mxu0 %v4500_v0  ;;  %v4231_v39 = vpack.c.bf16 %v288_v35, %v287_v34  ;;  %v426_v35 = vunpack.c.h.bf16 %v341_v31 }
  0x62   : > { %v4279_v40 = vpack.c.bf16 %v320_v38, %v319_v37  ;;  %v343_v37 = vld [vmem:[%s4636_s15 + $0xb0] sm:$0xff]  ;;  %v344_v38 = vld [vmem:[%s4636_s15 + $0xb8] sm:$0xff] }
  0x63   : > { %4214 = vmatpush1.bf16.msra.mxu1 %v4213_v44  ;;  %v387_v44 = vunpack.c.l.bf16 %v4754_v11  ;;  %v395_v11 = vunpack.c.l.bf16 %v326_v48  ;;  %v430_v41 = vunpack.c.h.bf16 %v343_v37 }
  0x64   : > { %4262 = vmatpush1.bf16.msra.mxu0 %v4261_v47  ;;  %4215 = vmatprep.subr.bf16.mxu1 %v4500_v0  ;;  %v325_v47 = vld [vmem:[%s4636_s15 + $0x20] sm:$0xff] }
  0x65   : > { %4263 = vmatprep.subr.bf16.mxu0 %v4500_v0  ;;  %v394_v50 = vunpack.c.h.bf16 %v325_v47  ;;  %v393_v53 = vunpack.c.l.bf16 %v325_v47 }
  0x67   : > { %4217 = vmatpush1.bf16.msra.mxu1 %v4216_v54  ;;  %v398_v54 = vunpack.c.h.bf16 %v327_v51 }
  0x68   : > { %4265 = vmatpush1.bf16.msra.mxu0 %v4264_v57  ;;  %4218 = vmatprep.subr.bf16.mxu1 %v4500_v0  ;;  %v330_v57 = vld [vmem:[%s4636_s15 + $0x48] sm:$0xff] }
  0x69   : > { %4266 = vmatprep.subr.bf16.mxu0 %v4500_v0  ;;  %v404_v61 = vunpack.c.h.bf16 %v330_v57  ;;  %v403_v2 = vunpack.c.l.bf16 %v330_v57 }
  0x6b   : > { %4220 = vmatpush1.bf16.msra.mxu1 %v4219_v1  ;;  %v401_v1 = vunpack.c.l.bf16 %v329_v56 }
  0x6c   : > { %4268 = vmatpush1.bf16.msra.mxu0 %v4267_v4  ;;  %4221 = vmatprep.subr.bf16.mxu1 %v4500_v0  ;;  %v408_v4 = vunpack.c.h.bf16 %v332_v63 }
  0x6d   : > { %4269 = vmatprep.subr.bf16.mxu0 %v4500_v0 }
  0x6f   : > { %4223 = vmatpush1.bf16.msra.mxu1 %v4222_v13  ;;  %v335_v13 = vld [vmem:[%s4636_s15 + $0x70] sm:$0xff] }
  0x70   : > { %4271 = vmatpush1.bf16.msra.mxu0 %v4270_v16  ;;  %4224 = vmatprep.subr.bf16.mxu1 %v4500_v0  ;;  %v411_v16 = vunpack.c.l.bf16 %v334_v6  ;;  %v414_v17 = vunpack.c.h.bf16 %v335_v13  ;;  %v413_v21 = vunpack.c.l.bf16 %v335_v13 }
  0x71   : > { %4272 = vmatprep.subr.bf16.mxu0 %v4500_v0 }
  0x73   : > { %4226 = vmatpush1.bf16.msra.mxu1 %v4225_v23  ;;  %v418_v23 = vunpack.c.h.bf16 %v337_v19 }
  0x74   : > { %4274 = vmatpush1.bf16.msra.mxu0 %v4273_v26  ;;  %4227 = vmatprep.subr.bf16.mxu1 %v4500_v0  ;;  %v340_v26 = vld [vmem:[%s4636_s15 + $0x98] sm:$0xff] }
  0x75   : > { %4275 = vmatprep.subr.bf16.mxu0 %v4500_v0  ;;  %v424_v30 = vunpack.c.h.bf16 %v340_v26  ;;  %v423_v34 = vunpack.c.l.bf16 %v340_v26 }
  0x77   : > { %4229 = vmatpush1.bf16.msra.mxu1 %v4228_v33  ;;  %v421_v33 = vunpack.c.l.bf16 %v339_v25 }
  0x78   : > { %4277 = vmatpush1.bf16.msra.mxu0 %v4276_v36  ;;  %4230 = vmatprep.subr.bf16.mxu1 %v4500_v0  ;;  %v428_v36 = vunpack.c.h.bf16 %v342_v32 }
  0x79   : > { %4278 = vmatprep.subr.bf16.mxu0 %v4500_v0  ;;  %v391_v0 = vunpack.c.l.bf16 %v324_v42  ;;  %v432_v42 = vunpack.c.h.bf16 %v344_v38 }
  0x7b   : > { %4232 = vmatpush1.bf16.msra.mxu1 %v4231_v39  ;;  %v425_v39 = vunpack.c.l.bf16 %v341_v31 }
  0x7c   : > { %4280 = vmatpush1.bf16.msra.mxu0 %v4279_v40  ;;  %v427_v40 = vunpack.c.l.bf16 %v342_v32 }
  0x7e   : > { %578 = vmatmul.mubr.f32.vlgmr.msra.gmra.mrb[0].mxu1 %v385_v43  ;;  %v345_v43 = vld [vmem:[%s4636_s15 + $0xc0] sm:$0xff] }
  0x7f   : > { %803 = vmatmul.mubr.f32.vlgmr.msra.gmra.mrb[0].mxu0 %v387_v44  ;;  %582 = vmatprep.mubr.f32.mxu1 %v390_v45  ;;  %v346_v44 = vld [vmem:[%s4636_s15 + $0xc8] sm:$0xff]  ;;  %v429_v45 = vunpack.c.l.bf16 %v343_v37  ;;  %v434_v47 = vunpack.c.h.bf16 %v345_v43 }
  0x80   : > { %807 = vmatprep.mubr.f32.mxu0 %v392_v46  ;;  %v431_v46 = vunpack.c.l.bf16 %v344_v38  ;;  %v436_v48 = vunpack.c.h.bf16 %v346_v44 }
  0x82   : > { %583 = vmatmul.mubr.f32.gmra.mrb[2].mxu1 %v389_v49  ;;  %v347_v49 = vld [vmem:[%s4636_s15 + $0xd0] sm:$0xff] }
  0x83   : > { %808 = vmatmul.mubr.f32.gmra.mrb[2].mxu0 %v391_v0  ;;  %587 = vmatprep.mubr.f32.mxu1 %v394_v50  ;;  %v348_v0 = vld [vmem:[%s4636_s15 + $0xd8] sm:$0xff]  ;;  %v433_v50 = vunpack.c.l.bf16 %v345_v43  ;;  %v438_v51 = vunpack.c.h.bf16 %v347_v49 }
  0x84   : > { %812 = vmatprep.mubr.f32.mxu0 %v396_v8  ;;  %v435_v8 = vunpack.c.l.bf16 %v346_v44  ;;  %v440_v52 = vunpack.c.h.bf16 %v348_v0 }
  0x86   : > { %588 = vmatmul.mubr.f32.gmra.mrb[4].mxu1 %v393_v53  ;;  %v349_v53 = vld [vmem:[%s4636_s15 + $0xe0] sm:$0xff] }
  0x87   : > { %813 = vmatmul.mubr.f32.gmra.mrb[4].mxu0 %v395_v11  ;;  %592 = vmatprep.mubr.f32.mxu1 %v398_v54  ;;  %v350_v11 = vld [vmem:[%s4636_s15 + $0xe8] sm:$0xff]  ;;  %v437_v54 = vunpack.c.l.bf16 %v347_v49  ;;  %v442_v56 = vunpack.c.h.bf16 %v349_v53 }
  0x88   : > { %817 = vmatprep.mubr.f32.mxu0 %v400_v55  ;;  %v439_v55 = vunpack.c.l.bf16 %v348_v0  ;;  %v444_v57 = vunpack.c.h.bf16 %v350_v11 }
  0x8a   : > { %593 = vmatmul.mubr.f32.gmra.mrb[6].mxu1 %v397_v58  ;;  %v351_v58 = vld [vmem:[%s4636_s15 + $0xf0] sm:$0xff] }
  0x8b   : > { %818 = vmatmul.mubr.f32.gmra.mrb[6].mxu0 %v399_v59  ;;  %597 = vmatprep.mubr.f32.mxu1 %v402_v60  ;;  %v352_v59 = vld [vmem:[%s4636_s15 + $0xf8] sm:$0xff]  ;;  %v441_v60 = vunpack.c.l.bf16 %v349_v53  ;;  %v446_v62 = vunpack.c.h.bf16 %v351_v58 }
  0x8c   : > { %822 = vmatprep.mubr.f32.mxu0 %v404_v61  ;;  %v443_v61 = vunpack.c.l.bf16 %v350_v11  ;;  %v448_v63 = vunpack.c.h.bf16 %v352_v59 }
  0x8e   : > { %598 = vmatmul.mubr.f32.gmra.mrb[8].mxu1 %v401_v1  ;;  %v353_v1 = vld [vmem:[%s4636_s15 + $0x100] sm:$0xff] }
  0x8f   : > { %823 = vmatmul.mubr.f32.gmra.mrb[8].mxu0 %v403_v2  ;;  %602 = vmatprep.mubr.f32.mxu1 %v406_v3  ;;  %v354_v2 = vld [vmem:[%s4636_s15 + $0x108] sm:$0xff]  ;;  %v445_v3 = vunpack.c.l.bf16 %v351_v58  ;;  %v450_v5 = vunpack.c.h.bf16 %v353_v1 }
  0x90   : > { %827 = vmatprep.mubr.f32.mxu0 %v408_v4  ;;  %v447_v4 = vunpack.c.l.bf16 %v352_v59  ;;  %v452_v6 = vunpack.c.h.bf16 %v354_v2 }
  0x92   : > { %603 = vmatmul.mubr.f32.gmra.mrb[10].mxu1 %v405_v7  ;;  %v355_v7 = vld [vmem:[%s4636_s15 + $0x110] sm:$0xff] }
  0x93   : > { %828 = vmatmul.mubr.f32.gmra.mrb[10].mxu0 %v407_v9  ;;  %607 = vmatprep.mubr.f32.mxu1 %v410_v10  ;;  %v356_v9 = vld [vmem:[%s4636_s15 + $0x118] sm:$0xff]  ;;  %v449_v10 = vunpack.c.l.bf16 %v353_v1  ;;  %v454_v13 = vunpack.c.h.bf16 %v355_v7 }
  0x94   : > { %832 = vmatprep.mubr.f32.mxu0 %v412_v12  ;;  %v451_v12 = vunpack.c.l.bf16 %v354_v2  ;;  %v456_v14 = vunpack.c.h.bf16 %v356_v9 }
  0x96   : > { %608 = vmatmul.mubr.f32.gmra.mrb[12].mxu1 %v409_v15  ;;  %v357_v15 = vld [vmem:[%s4636_s15 + $0x120] sm:$0xff] }
  0x97   : > { %833 = vmatmul.mubr.f32.gmra.mrb[12].mxu0 %v411_v16  ;;  %612 = vmatprep.mubr.f32.mxu1 %v414_v17  ;;  %v358_v16 = vld [vmem:[%s4636_s15 + $0x128] sm:$0xff]  ;;  %v453_v17 = vunpack.c.l.bf16 %v355_v7  ;;  %v458_v19 = vunpack.c.h.bf16 %v357_v15 }
  0x98   : > { %837 = vmatprep.mubr.f32.mxu0 %v416_v18  ;;  %v455_v18 = vunpack.c.l.bf16 %v356_v9  ;;  %v460_v20 = vunpack.c.h.bf16 %v358_v16 }
  0x9a   : > { %613 = vmatmul.mubr.f32.gmra.mrb[14].mxu1 %v413_v21  ;;  %v359_v21 = vld [vmem:[%s4636_s15 + $0x130] sm:$0xff] }
  0x9b   : > { %838 = vmatmul.mubr.f32.gmra.mrb[14].mxu0 %v415_v22  ;;  %617 = vmatprep.mubr.f32.mxu1 %v418_v23  ;;  %v360_v22 = vld [vmem:[%s4636_s15 + $0x138] sm:$0xff]  ;;  %v457_v23 = vunpack.c.l.bf16 %v357_v15  ;;  %v462_v25 = vunpack.c.h.bf16 %v359_v21 }
  0x9c   : > { %842 = vmatprep.mubr.f32.mxu0 %v420_v24  ;;  %v459_v24 = vunpack.c.l.bf16 %v358_v16  ;;  %v464_v26 = vunpack.c.h.bf16 %v360_v22 }
  0x9e   : > { %618 = vmatmul.mubr.f32.gmra.mrb[16].mxu1 %v417_v27  ;;  %v361_v27 = vld [vmem:[%s4636_s15 + $0x140] sm:$0xff] }
  0x9f   : > { %843 = vmatmul.mubr.f32.gmra.mrb[16].mxu0 %v419_v28  ;;  %622 = vmatprep.mubr.f32.mxu1 %v422_v29  ;;  %v362_v28 = vld [vmem:[%s4636_s15 + $0x148] sm:$0xff]  ;;  %v461_v29 = vunpack.c.l.bf16 %v359_v21  ;;  %v466_v31 = vunpack.c.h.bf16 %v361_v27 }
  0xa0   : > { %847 = vmatprep.mubr.f32.mxu0 %v424_v30  ;;  %v463_v30 = vunpack.c.l.bf16 %v360_v22  ;;  %v468_v32 = vunpack.c.h.bf16 %v362_v28 }
  0xa2   : > { %623 = vmatmul.mubr.f32.gmra.mrb[18].mxu1 %v421_v33  ;;  %v363_v33 = vld [vmem:[%s4636_s15 + $0x150] sm:$0xff] }
  0xa3   : > { %848 = vmatmul.mubr.f32.gmra.mrb[18].mxu0 %v423_v34  ;;  %627 = vmatprep.mubr.f32.mxu1 %v426_v35  ;;  %v364_v34 = vld [vmem:[%s4636_s15 + $0x158] sm:$0xff]  ;;  %v465_v35 = vunpack.c.l.bf16 %v361_v27  ;;  %v470_v37 = vunpack.c.h.bf16 %v363_v33 }
  0xa4   : > { %852 = vmatprep.mubr.f32.mxu0 %v428_v36  ;;  %v467_v36 = vunpack.c.l.bf16 %v362_v28  ;;  %v472_v38 = vunpack.c.h.bf16 %v364_v34 }
  0xa6   : > { %628 = vmatmul.mubr.f32.gmra.mrb[20].mxu1 %v425_v39  ;;  %v365_v39 = vld [vmem:[%s4636_s15 + $0x160] sm:$0xff] }
  0xa7   : > { %853 = vmatmul.mubr.f32.gmra.mrb[20].mxu0 %v427_v40  ;;  %632 = vmatprep.mubr.f32.mxu1 %v430_v41  ;;  %v366_v40 = vld [vmem:[%s4636_s15 + $0x168] sm:$0xff]  ;;  %v469_v41 = vunpack.c.l.bf16 %v363_v33  ;;  %v474_v43 = vunpack.c.h.bf16 %v365_v39 }
  0xa8   : > { %857 = vmatprep.mubr.f32.mxu0 %v432_v42  ;;  %v471_v42 = vunpack.c.l.bf16 %v364_v34  ;;  %v476_v44 = vunpack.c.h.bf16 %v366_v40 }
  0xaa   : > { %633 = vmatmul.mubr.f32.gmra.mrb[22].mxu1 %v429_v45  ;;  %v367_v45 = vld [vmem:[%s4636_s15 + $0x170] sm:$0xff] }
  0xab   : > { %858 = vmatmul.mubr.f32.gmra.mrb[22].mxu0 %v431_v46  ;;  %637 = vmatprep.mubr.f32.mxu1 %v434_v47  ;;  %v368_v46 = vld [vmem:[%s4636_s15 + $0x178] sm:$0xff]  ;;  %v473_v47 = vunpack.c.l.bf16 %v365_v39  ;;  %v478_v49 = vunpack.c.h.bf16 %v367_v45 }
  0xac   : > { %862 = vmatprep.mubr.f32.mxu0 %v436_v48  ;;  %v475_v48 = vunpack.c.l.bf16 %v366_v40  ;;  %v480_v0 = vunpack.c.h.bf16 %v368_v46  ;;  %v965_v40 = vld [vmem:[%s4942_s5] sm:$0xff] }
  0xae   : > { %638 = vmatmul.mubr.f32.gmra.mrb[24].mxu1 %v433_v50  ;;  %v369_v50 = vld [vmem:[%s4636_s15 + $0x180] sm:$0xff] }
  0xaf   : > { %863 = vmatmul.mubr.f32.gmra.mrb[24].mxu0 %v435_v8  ;;  %642 = vmatprep.mubr.f32.mxu1 %v438_v51  ;;  %v370_v8 = vld [vmem:[%s4636_s15 + $0x188] sm:$0xff]  ;;  %v477_v51 = vunpack.c.l.bf16 %v367_v45  ;;  %v482_v53 = vunpack.c.h.bf16 %v369_v50 }
  0xb0   : > { %867 = vmatprep.mubr.f32.mxu0 %v440_v52  ;;  %v479_v52 = vunpack.c.l.bf16 %v368_v46  ;;  %v484_v11 = vunpack.c.h.bf16 %v370_v8 }
  0xb2   : > { %643 = vmatmul.mubr.f32.gmra.mrb[26].mxu1 %v437_v54  ;;  %v371_v54 = vld [vmem:[%s4636_s15 + $0x190] sm:$0xff] }
  0xb3   : > { %868 = vmatmul.mubr.f32.gmra.mrb[26].mxu0 %v439_v55  ;;  %647 = vmatprep.mubr.f32.mxu1 %v442_v56  ;;  %v372_v55 = vld [vmem:[%s4636_s15 + $0x198] sm:$0xff]  ;;  %v481_v56 = vunpack.c.l.bf16 %v369_v50  ;;  %v486_v58 = vunpack.c.h.bf16 %v371_v54 }
  0xb4   : > { %872 = vmatprep.mubr.f32.mxu0 %v444_v57  ;;  %v483_v57 = vunpack.c.l.bf16 %v370_v8  ;;  %v488_v59 = vunpack.c.h.bf16 %v372_v55 }
  0xb6   : > { %648 = vmatmul.mubr.f32.gmra.mrb[28].mxu1 %v441_v60  ;;  %v373_v60 = vld [vmem:[%s4636_s15 + $0x1a0] sm:$0xff] }
  0xb7   : > { %873 = vmatmul.mubr.f32.gmra.mrb[28].mxu0 %v443_v61  ;;  %652 = vmatprep.mubr.f32.mxu1 %v446_v62  ;;  %v374_v61 = vld [vmem:[%s4636_s15 + $0x1a8] sm:$0xff]  ;;  %v485_v62 = vunpack.c.l.bf16 %v371_v54  ;;  %v490_v1 = vunpack.c.h.bf16 %v373_v60 }
  0xb8   : > { %877 = vmatprep.mubr.f32.mxu0 %v448_v63  ;;  %v487_v63 = vunpack.c.l.bf16 %v372_v55  ;;  %v492_v2 = vunpack.c.h.bf16 %v374_v61 }
  0xba   : > { %653 = vmatmul.mubr.f32.gmra.mrb[30].mxu1 %v445_v3  ;;  %v375_v3 = vld [vmem:[%s4636_s15 + $0x1b0] sm:$0xff] }
  0xbb   : > { %878 = vmatmul.mubr.f32.gmra.mrb[30].mxu0 %v447_v4  ;;  %657 = vmatprep.mubr.f32.mxu1 %v450_v5  ;;  %v376_v4 = vld [vmem:[%s4636_s15 + $0x1b8] sm:$0xff]  ;;  %v489_v5 = vunpack.c.l.bf16 %v373_v60  ;;  %v494_v7 = vunpack.c.h.bf16 %v375_v3 }
  0xbc   : > { %882 = vmatprep.mubr.f32.mxu0 %v452_v6  ;;  %v491_v6 = vunpack.c.l.bf16 %v374_v61  ;;  %v496_v9 = vunpack.c.h.bf16 %v376_v4  ;;  %v968_v60 = vld [vmem:[%s4942_s5 + $0x18] sm:$0xff] }
  0xbe   : > { %658 = vmatmul.mubr.f32.gmra.mrb[32].mxu1 %v449_v10  ;;  %v377_v10 = vld [vmem:[%s4636_s15 + $0x1c0] sm:$0xff] }
  0xbf   : > { %883 = vmatmul.mubr.f32.gmra.mrb[32].mxu0 %v451_v12  ;;  %662 = vmatprep.mubr.f32.mxu1 %v454_v13  ;;  %v378_v12 = vld [vmem:[%s4636_s15 + $0x1c8] sm:$0xff]  ;;  %v493_v13 = vunpack.c.l.bf16 %v375_v3  ;;  %v498_v15 = vunpack.c.h.bf16 %v377_v10 }
  0xc0   : > { %887 = vmatprep.mubr.f32.mxu0 %v456_v14  ;;  %v495_v14 = vunpack.c.l.bf16 %v376_v4  ;;  %v500_v16 = vunpack.c.h.bf16 %v378_v12 }
  0xc2   : > { %663 = vmatmul.mubr.f32.gmra.mrb[34].mxu1 %v453_v17  ;;  %v379_v17 = vld [vmem:[%s4636_s15 + $0x1d0] sm:$0xff] }
  0xc3   : > { %888 = vmatmul.mubr.f32.gmra.mrb[34].mxu0 %v455_v18  ;;  %667 = vmatprep.mubr.f32.mxu1 %v458_v19  ;;  %v380_v18 = vld [vmem:[%s4636_s15 + $0x1d8] sm:$0xff]  ;;  %v497_v19 = vunpack.c.l.bf16 %v377_v10  ;;  %v502_v21 = vunpack.c.h.bf16 %v379_v17 }
  0xc4   : > { %892 = vmatprep.mubr.f32.mxu0 %v460_v20  ;;  %v499_v20 = vunpack.c.l.bf16 %v378_v12  ;;  %v504_v22 = vunpack.c.h.bf16 %v380_v18 }
  0xc6   : > { %668 = vmatmul.mubr.f32.gmra.mrb[36].mxu1 %v457_v23  ;;  %v381_v23 = vld [vmem:[%s4636_s15 + $0x1e0] sm:$0xff] }
  0xc7   : > { %893 = vmatmul.mubr.f32.gmra.mrb[36].mxu0 %v459_v24  ;;  %672 = vmatprep.mubr.f32.mxu1 %v462_v25  ;;  %v382_v24 = vld [vmem:[%s4636_s15 + $0x1e8] sm:$0xff]  ;;  %v501_v25 = vunpack.c.l.bf16 %v379_v17  ;;  %v506_v27 = vunpack.c.h.bf16 %v381_v23 }
  0xc8   : > { %897 = vmatprep.mubr.f32.mxu0 %v464_v26  ;;  %v503_v26 = vunpack.c.l.bf16 %v380_v18  ;;  %v508_v28 = vunpack.c.h.bf16 %v382_v24 }
  0xca   : > { %673 = vmatmul.mubr.f32.gmra.mrb[38].mxu1 %v461_v29  ;;  %v383_v29 = vld [vmem:[%s4636_s15 + $0x1f0] sm:$0xff] }
  0xcb   : > { %898 = vmatmul.mubr.f32.gmra.mrb[38].mxu0 %v463_v30  ;;  %677 = vmatprep.mubr.f32.mxu1 %v466_v31  ;;  %v384_v30 = vld [vmem:[%s4636_s15 + $0x1f8] sm:$0xff]  ;;  %v505_v31 = vunpack.c.l.bf16 %v381_v23  ;;  %v510_v33 = vunpack.c.h.bf16 %v383_v29  ;;  %v971_v23 = vld [vmem:[%s4942_s5 + $0x30] sm:$0xff] }
  0xcc   : > { %902 = vmatprep.mubr.f32.mxu0 %v468_v32  ;;  %v507_v32 = vunpack.c.l.bf16 %v382_v24  ;;  %v512_v34 = vunpack.c.h.bf16 %v384_v30 }
  0xce   : > { %678 = vmatmul.mubr.f32.gmra.mrb[40].mxu1 %v465_v35  ;;  %v509_v35 = vunpack.c.l.bf16 %v383_v29 }
  0xcf   : > { %903 = vmatmul.mubr.f32.gmra.mrb[40].mxu0 %v467_v36  ;;  %682 = vmatprep.mubr.f32.mxu1 %v470_v37  ;;  %v511_v36 = vunpack.c.l.bf16 %v384_v30 }
  0xd0   : > { %907 = vmatprep.mubr.f32.mxu0 %v472_v38 }
  0xd2   : > { %683 = vmatmul.mubr.f32.gmra.mrb[42].mxu1 %v469_v41 }
  0xd3   : > { %908 = vmatmul.mubr.f32.gmra.mrb[42].mxu0 %v471_v42  ;;  %687 = vmatprep.mubr.f32.mxu1 %v474_v43 }
  0xd4   : > { %912 = vmatprep.mubr.f32.mxu0 %v476_v44 }
  0xd6   : > { %688 = vmatmul.mubr.f32.gmra.mrb[44].mxu1 %v473_v47  ;;  %v966_v47 = vld [vmem:[%s4942_s5 + $0x8] sm:$0xff] }
  0xd7   : > { %913 = vmatmul.mubr.f32.gmra.mrb[44].mxu0 %v475_v48  ;;  %692 = vmatprep.mubr.f32.mxu1 %v478_v49 }
  0xd8   : > { %917 = vmatprep.mubr.f32.mxu0 %v480_v0 }
  0xda   : > { %693 = vmatmul.mubr.f32.gmra.mrb[46].mxu1 %v477_v51 }
  0xdb   : > { %918 = vmatmul.mubr.f32.gmra.mrb[46].mxu0 %v479_v52  ;;  %697 = vmatprep.mubr.f32.mxu1 %v482_v53  ;;  %v967_v53 = vld [vmem:[%s4942_s5 + $0x10] sm:$0xff] }
  0xdc   : > { %922 = vmatprep.mubr.f32.mxu0 %v484_v11 }
  0xde   : > { %698 = vmatmul.mubr.f32.gmra.mrb[48].mxu1 %v481_v56 }
  0xdf   : > { %923 = vmatmul.mubr.f32.gmra.mrb[48].mxu0 %v483_v57  ;;  %702 = vmatprep.mubr.f32.mxu1 %v486_v58 }
  0xe0   : > { %927 = vmatprep.mubr.f32.mxu0 %v488_v59 }
  0xe2   : > { %703 = vmatmul.mubr.f32.gmra.mrb[50].mxu1 %v485_v62 }
  0xe3   : > { %928 = vmatmul.mubr.f32.gmra.mrb[50].mxu0 %v487_v63  ;;  %707 = vmatprep.mubr.f32.mxu1 %v490_v1 }
  0xe4   : > { %932 = vmatprep.mubr.f32.mxu0 %v492_v2 }
  0xe6   : > { %708 = vmatmul.mubr.f32.gmra.mrb[52].mxu1 %v489_v5  ;;  %v969_v5 = vld [vmem:[%s4942_s5 + $0x20] sm:$0xff] }
  0xe7   : > { %933 = vmatmul.mubr.f32.gmra.mrb[52].mxu0 %v491_v6  ;;  %712 = vmatprep.mubr.f32.mxu1 %v494_v7 }
  0xe8   : > { %937 = vmatprep.mubr.f32.mxu0 %v496_v9 }
  0xea   : > { %713 = vmatmul.mubr.f32.gmra.mrb[54].mxu1 %v493_v13 }
  0xeb   : > { %938 = vmatmul.mubr.f32.gmra.mrb[54].mxu0 %v495_v14  ;;  %717 = vmatprep.mubr.f32.mxu1 %v498_v15  ;;  %v970_v15 = vld [vmem:[%s4942_s5 + $0x28] sm:$0xff] }
  0xec   : > { %942 = vmatprep.mubr.f32.mxu0 %v500_v16 }
  0xee   : > { %718 = vmatmul.mubr.f32.gmra.mrb[56].mxu1 %v497_v19 }
  0xef   : > { %943 = vmatmul.mubr.f32.gmra.mrb[56].mxu0 %v499_v20  ;;  %722 = vmatprep.mubr.f32.mxu1 %v502_v21 }
  0xf0   : > { %947 = vmatprep.mubr.f32.mxu0 %v504_v22 }
  0xf2   : > { %723 = vmatmul.mubr.f32.gmra.mrb[58].mxu1 %v501_v25 }
  0xf3   : > { %948 = vmatmul.mubr.f32.gmra.mrb[58].mxu0 %v503_v26  ;;  %727 = vmatprep.mubr.f32.mxu1 %v506_v27 }
  0xf4   : > { %952 = vmatprep.mubr.f32.mxu0 %v508_v28 }
  0xf6   : > { %728 = vmatmul.mubr.f32.gmra.mrb[60].mxu1 %v505_v31  ;;  %v972_v31 = vld [vmem:[%s4942_s5 + $0x38] sm:$0xff] }
  0xf7   : > { %953 = vmatmul.mubr.f32.gmra.mrb[60].mxu0 %v507_v32  ;;  %732 = vmatprep.mubr.f32.mxu1 %v510_v33  ;;  %v4501_v32 = vmov 0  }
  0xf8   : > { %957 = vmatprep.mubr.f32.mxu0 %v512_v34  ;;  %4381 = vset.pattern.permute.xlu0 %v4501_v32 }
  0xf9   : > { %4382 = vset.pattern.permute.xlu1 %v4501_v32 }
  0xfa   : > { %733 = vmatmul.mubr.f32.gmra.mrb[62].mxu1 %v509_v35 }
  0xfb   : > { %958 = vmatmul.mubr.f32.gmra.mrb[62].mxu0 %v511_v36 }
 0x151   : > { %v579_v37 = vpop.f32.mrb[0].mxu1 }
 0x152   : > { %v804_v38 = vpop.f32.mrb[0].mxu0  ;;  %v581_v39 = vpop.f32.mrb[1].mxu1 }
 0x153   : > { %v805_v41 = vadd.f32 %v804_v38, %v579_v37  ;;  %v806_v42 = vpop.f32.mrb[1].mxu0 }
 0x155   : > { %v584_v43 = vpop.f32.mrb[2].mxu1  ;;  %v998_v44 = vmul.f32 %v965_v40, %v805_v41  ;;  %v973_v40 = vld [vmem:[%s4942_s5 + $0x40] sm:$0xff] }
 0x156   : > { %v809_v45 = vpop.f32.mrb[2].mxu0  ;;  %v586_v46 = vpop.f32.mrb[3].mxu1 }
 0x157   : > { %v810_v48 = vadd.f32 %v809_v45, %v584_v43  ;;  %v811_v49 = vpop.f32.mrb[3].mxu0  ;;  %v1031_v0 = vsel %vm1030_vm0, %v998_v44, 0.0 }
 0x158   : > { %1032 = vadd.xlane.f32.xlu0 %v1031_v0 }
 0x159   : > { %v589_v50 = vpop.f32.mrb[4].mxu1  ;;  %v999_v8 = vmul.f32 %v966_v47, %v810_v48  ;;  %v974_v48 = vld [vmem:[%s4942_s5 + $0x48] sm:$0xff] }
 0x15a   : > { %v814_v51 = vpop.f32.mrb[4].mxu0  ;;  %v591_v52 = vpop.f32.mrb[5].mxu1 }
 0x15b   : > { %v815_v11 = vadd.f32 %v814_v51, %v589_v50  ;;  %v816_v54 = vpop.f32.mrb[5].mxu0  ;;  %v1034_v55 = vsel %vm1030_vm0, %v999_v8, 0.0 }
 0x15c   : > { %1035 = vadd.xlane.f32.xlu0 %v1034_v55 }
 0x15d   : > { %v594_v56 = vpop.f32.mrb[6].mxu1  ;;  %v1000_v57 = vmul.f32 %v967_v53, %v815_v11  ;;  %v975_v11 = vld [vmem:[%s4942_s5 + $0x50] sm:$0xff] }
 0x15e   : > { %v819_v58 = vpop.f32.mrb[6].mxu0  ;;  %v596_v59 = vpop.f32.mrb[7].mxu1 }
 0x15f   : > { %v820_v61 = vadd.f32 %v819_v58, %v594_v56  ;;  %v821_v62 = vpop.f32.mrb[7].mxu0  ;;  %v1037_v63 = vsel %vm1030_vm0, %v1000_v57, 0.0 }
 0x160   : > { %1038 = vadd.xlane.f32.xlu1 %v1037_v63 }
 0x161   : > { %v599_v1 = vpop.f32.mrb[8].mxu1  ;;  %v1001_v2 = vmul.f32 %v968_v60, %v820_v61  ;;  %v976_v61 = vld [vmem:[%s4942_s5 + $0x58] sm:$0xff] }
 0x162   : > { %v824_v3 = vpop.f32.mrb[8].mxu0  ;;  %v601_v4 = vpop.f32.mrb[9].mxu1 }
 0x163   : > { %v825_v6 = vadd.f32 %v824_v3, %v599_v1  ;;  %v826_v7 = vpop.f32.mrb[9].mxu0  ;;  %v1040_v9 = vsel %vm1030_vm0, %v1001_v2, 0.0 }
 0x164   : > { %1041 = vadd.xlane.f32.xlu1 %v1040_v9 }
 0x165   : > { %v604_v10 = vpop.f32.mrb[10].mxu1  ;;  %v1002_v12 = vmul.f32 %v969_v5, %v825_v6  ;;  %v977_v6 = vld [vmem:[%s4942_s5 + $0x60] sm:$0xff] }
 0x166   : > { %v829_v13 = vpop.f32.mrb[10].mxu0  ;;  %v606_v14 = vpop.f32.mrb[11].mxu1 }
 0x167   : > { %v830_v16 = vadd.f32 %v829_v13, %v604_v10  ;;  %v831_v17 = vpop.f32.mrb[11].mxu0  ;;  %v1043_v18 = vsel %vm1030_vm0, %v1002_v12, 0.0 }
 0x168   : > { %1044 = vadd.xlane.f32.xlu0 %v1043_v18 }
 0x169   : > { %v609_v19 = vpop.f32.mrb[12].mxu1  ;;  %v1003_v20 = vmul.f32 %v970_v15, %v830_v16  ;;  %v978_v16 = vld [vmem:[%s4942_s5 + $0x68] sm:$0xff] }
 0x16a   : > { %v834_v21 = vpop.f32.mrb[12].mxu0  ;;  %v611_v22 = vpop.f32.mrb[13].mxu1 }
 0x16b   : > { %v835_v24 = vadd.f32 %v834_v21, %v609_v19  ;;  %v836_v25 = vpop.f32.mrb[13].mxu0  ;;  %v1046_v26 = vsel %vm1030_vm0, %v1003_v20, 0.0 }
 0x16c   : > { %1047 = vadd.xlane.f32.xlu1 %v1046_v26 }
 0x16d   : > { %v614_v27 = vpop.f32.mrb[14].mxu1  ;;  %v1004_v28 = vmul.f32 %v971_v23, %v835_v24  ;;  %v979_v24 = vld [vmem:[%s4942_s5 + $0x70] sm:$0xff] }
 0x16e   : > { %v839_v29 = vpop.f32.mrb[14].mxu0  ;;  %v616_v30 = vpop.f32.mrb[15].mxu1 }
 0x16f   : > { %v840_v33 = vadd.f32 %v839_v29, %v614_v27  ;;  %v841_v34 = vpop.f32.mrb[15].mxu0  ;;  %v1049_v35 = vsel %vm1030_vm0, %v1004_v28, 0.0 }
 0x170   : > { %1050 = vadd.xlane.f32.xlu0 %v1049_v35 }
 0x171   : > { %v619_v36 = vpop.f32.mrb[16].mxu1  ;;  %v1005_v37 = vmul.f32 %v972_v31, %v840_v33 }
 0x172   : > { %v844_v38 = vpop.f32.mrb[16].mxu0  ;;  %v621_v39 = vpop.f32.mrb[17].mxu1 }
 0x173   : > { %v845_v41 = vadd.f32 %v844_v38, %v619_v36  ;;  %v846_v42 = vpop.f32.mrb[17].mxu0  ;;  %v1052_v43 = vsel %vm1030_vm0, %v1005_v37, 0.0  ;;  %v981_v38 = vld [vmem:[%s4942_s5 + $0x80] sm:$0xff] }
 0x174   : > { %1053 = vadd.xlane.f32.xlu1 %v1052_v43 }
 0x175   : > { %v624_v44 = vpop.f32.mrb[18].mxu1  ;;  %v1006_v45 = vmul.f32 %v973_v40, %v845_v41 }
 0x176   : > { %v849_v46 = vpop.f32.mrb[18].mxu0  ;;  %v626_v47 = vpop.f32.mrb[19].mxu1 }
 0x177   : > { %v850_v49 = vadd.f32 %v849_v46, %v624_v44  ;;  %v851_v0 = vpop.f32.mrb[19].mxu0  ;;  %v1055_v50 = vsel %vm1030_vm0, %v1006_v45, 0.0  ;;  %v982_v45 = vld [vmem:[%s4942_s5 + $0x88] sm:$0xff] }
 0x178   : > { %1056 = vadd.xlane.f32.xlu0 %v1055_v50 }
 0x179   : > { %v629_v8 = vpop.f32.mrb[20].mxu1  ;;  %v1007_v51 = vmul.f32 %v974_v48, %v850_v49 }
 0x17a   : > { %v854_v52 = vpop.f32.mrb[20].mxu0  ;;  %v631_v53 = vpop.f32.mrb[21].mxu1 }
 0x17b   : > { %v855_v54 = vadd.f32 %v854_v52, %v629_v8  ;;  %v856_v55 = vpop.f32.mrb[21].mxu0  ;;  %v1058_v56 = vsel %vm1030_vm0, %v1007_v51, 0.0  ;;  %v983_v51 = vld [vmem:[%s4942_s5 + $0x90] sm:$0xff] }
 0x17c   : > { %1059 = vadd.xlane.f32.xlu1 %v1058_v56 }
 0x17d   : > { %v634_v57 = vpop.f32.mrb[22].mxu1  ;;  %v1008_v58 = vmul.f32 %v975_v11, %v855_v54 }
 0x17e   : > { %v859_v59 = vpop.f32.mrb[22].mxu0  ;;  %v636_v60 = vpop.f32.mrb[23].mxu1 }
 0x17f   : > { %v860_v62 = vadd.f32 %v859_v59, %v634_v57  ;;  %v861_v63 = vpop.f32.mrb[23].mxu0  ;;  %v1061_v1 = vsel %vm1030_vm0, %v1008_v58, 0.0  ;;  %v984_v58 = vld [vmem:[%s4942_s5 + $0x98] sm:$0xff] }
 0x180   : > { %1062 = vadd.xlane.f32.xlu0 %v1061_v1 }
 0x181   : > { %v639_v2 = vpop.f32.mrb[24].mxu1  ;;  %v1009_v3 = vmul.f32 %v976_v61, %v860_v62 }
 0x182   : > { %v864_v4 = vpop.f32.mrb[24].mxu0  ;;  %v641_v5 = vpop.f32.mrb[25].mxu1 }
 0x183   : > { %v865_v7 = vadd.f32 %v864_v4, %v639_v2  ;;  %v866_v9 = vpop.f32.mrb[25].mxu0  ;;  %v1064_v10 = vsel %vm1030_vm0, %v1009_v3, 0.0  ;;  %v985_v3 = vld [vmem:[%s4942_s5 + $0xa0] sm:$0xff] }
 0x184   : > { %1065 = vadd.xlane.f32.xlu1 %v1064_v10 }
 0x185   : > { %v644_v12 = vpop.f32.mrb[26].mxu1  ;;  %v1010_v13 = vmul.f32 %v977_v6, %v865_v7 }
 0x186   : > { %v869_v14 = vpop.f32.mrb[26].mxu0  ;;  %v646_v15 = vpop.f32.mrb[27].mxu1 }
 0x187   : > { %v870_v17 = vadd.f32 %v869_v14, %v644_v12  ;;  %v871_v18 = vpop.f32.mrb[27].mxu0  ;;  %v1067_v19 = vsel %vm1030_vm0, %v1010_v13, 0.0  ;;  %v986_v13 = vld [vmem:[%s4942_s5 + $0xa8] sm:$0xff] }
 0x188   : > { %1068 = vadd.xlane.f32.xlu0 %v1067_v19 }
 0x189   : > { %v649_v20 = vpop.f32.mrb[28].mxu1  ;;  %v1011_v21 = vmul.f32 %v978_v16, %v870_v17 }
 0x18a   : > { %v874_v22 = vpop.f32.mrb[28].mxu0  ;;  %v651_v23 = vpop.f32.mrb[29].mxu1 }
 0x18b   : > { %v875_v25 = vadd.f32 %v874_v22, %v649_v20  ;;  %v876_v26 = vpop.f32.mrb[29].mxu0  ;;  %v1070_v27 = vsel %vm1030_vm0, %v1011_v21, 0.0  ;;  %v987_v21 = vld [vmem:[%s4942_s5 + $0xb0] sm:$0xff] }
 0x18c   : > { %1071 = vadd.xlane.f32.xlu0 %v1070_v27 }
 0x18d   : > { %v654_v28 = vpop.f32.mrb[30].mxu1  ;;  %v1012_v29 = vmul.f32 %v979_v24, %v875_v25 }
 0x18e   : > { %v879_v30 = vpop.f32.mrb[30].mxu0  ;;  %v656_v31 = vpop.f32.mrb[31].mxu1 }
 0x18f   : > { %v4973_v32 = vadd.f32 %v879_v30, %v654_v28  ;;  %v881_v33 = vpop.f32.mrb[31].mxu0  ;;  %v1073_v34 = vsel %vm1030_vm0, %v1012_v29, 0.0  ;;  %v988_v29 = vld [vmem:[%s4942_s5 + $0xb8] sm:$0xff] }
 0x190   : > { %1074 = vadd.xlane.f32.xlu0 %v1073_v34 }
 0x191   : > { %v659_v35 = vpop.f32.mrb[32].mxu1 }
 0x192   : > { %v884_v36 = vpop.f32.mrb[32].mxu0  ;;  %v661_v37 = vpop.f32.mrb[33].mxu1 }
 0x193   : > { %v885_v39 = vadd.f32 %v884_v36, %v659_v35  ;;  %v886_v40 = vpop.f32.mrb[33].mxu0 }
 0x195   : > { %v664_v41 = vpop.f32.mrb[34].mxu1  ;;  %v1014_v42 = vmul.f32 %v981_v38, %v885_v39  ;;  %v989_v38 = vld [vmem:[%s4942_s5 + $0xc0] sm:$0xff] }
 0x196   : > { %v889_v43 = vpop.f32.mrb[34].mxu0  ;;  %v666_v44 = vpop.f32.mrb[35].mxu1 }
 0x197   : > { %v890_v46 = vadd.f32 %v889_v43, %v664_v41  ;;  %v891_v47 = vpop.f32.mrb[35].mxu0  ;;  %v1079_v48 = vsel %vm1030_vm0, %v1014_v42, 0.0 }
 0x198   : > { %1080 = vadd.xlane.f32.xlu1 %v1079_v48 }
 0x199   : > { %v669_v49 = vpop.f32.mrb[36].mxu1  ;;  %v1015_v0 = vmul.f32 %v982_v45, %v890_v46  ;;  %v990_v46 = vld [vmem:[%s4942_s5 + $0xc8] sm:$0xff] }
 0x19a   : > { %v894_v50 = vpop.f32.mrb[36].mxu0  ;;  %v671_v8 = vpop.f32.mrb[37].mxu1 }
 0x19b   : > { %v895_v52 = vadd.f32 %v894_v50, %v669_v49  ;;  %v896_v53 = vpop.f32.mrb[37].mxu0  ;;  %v1082_v11 = vsel %vm1030_vm0, %v1015_v0, 0.0 }
 0x19c   : > { %1083 = vadd.xlane.f32.xlu0 %v1082_v11 }
 0x19d   : > { %v674_v54 = vpop.f32.mrb[38].mxu1  ;;  %v1016_v55 = vmul.f32 %v983_v51, %v895_v52  ;;  %v991_v52 = vld [vmem:[%s4942_s5 + $0xd0] sm:$0xff] }
 0x19e   : > { %v899_v56 = vpop.f32.mrb[38].mxu0  ;;  %v676_v57 = vpop.f32.mrb[39].mxu1 }
 0x19f   : > { %v900_v59 = vadd.f32 %v899_v56, %v674_v54  ;;  %v901_v60 = vpop.f32.mrb[39].mxu0  ;;  %v1085_v61 = vsel %vm1030_vm0, %v1016_v55, 0.0 }
 0x1a0   : > { %1086 = vadd.xlane.f32.xlu1 %v1085_v61 }
 0x1a1   : > { %v679_v62 = vpop.f32.mrb[40].mxu1  ;;  %v1017_v63 = vmul.f32 %v984_v58, %v900_v59  ;;  %v992_v59 = vld [vmem:[%s4942_s5 + $0xd8] sm:$0xff] }
 0x1a2   : > { %v904_v1 = vpop.f32.mrb[40].mxu0  ;;  %v681_v2 = vpop.f32.mrb[41].mxu1 }
 0x1a3   : > { %v905_v4 = vadd.f32 %v904_v1, %v679_v62  ;;  %v906_v5 = vpop.f32.mrb[41].mxu0  ;;  %v1088_v6 = vsel %vm1030_vm0, %v1017_v63, 0.0  ;;  %v980_v63 = vld [vmem:[%s4942_s5 + $0x78] sm:$0xff] }
 0x1a4   : > { %1089 = vadd.xlane.f32.xlu0 %v1088_v6  ;;  %v993_v5 = vld [vmem:[%s4942_s5 + $0xe0] sm:$0xff] }
 0x1a5   : > { %v684_v7 = vpop.f32.mrb[42].mxu1  ;;  %v1018_v9 = vmul.f32 %v985_v3, %v905_v4 }
 0x1a6   : > { %v909_v10 = vpop.f32.mrb[42].mxu0  ;;  %v686_v12 = vpop.f32.mrb[43].mxu1 }
 0x1a7   : > { %v910_v14 = vadd.f32 %v909_v10, %v684_v7  ;;  %v911_v15 = vpop.f32.mrb[43].mxu0  ;;  %v1091_v16 = vsel %vm1030_vm0, %v1018_v9, 0.0  ;;  %v1013_v10 = vmul.f32 %v980_v63, %v4973_v32 }
 0x1a8   : > { %1092 = vadd.xlane.f32.xlu1 %v1091_v16  ;;  %v994_v16 = vld [vmem:[%s4942_s5 + $0xe8] sm:$0xff] }
 0x1a9   : > { %v689_v17 = vpop.f32.mrb[44].mxu1  ;;  %v1019_v18 = vmul.f32 %v986_v13, %v910_v14 }
 0x1aa   : > { %v914_v19 = vpop.f32.mrb[44].mxu0  ;;  %v691_v20 = vpop.f32.mrb[45].mxu1 }
 0x1ab   : > { %v915_v22 = vadd.f32 %v914_v19, %v689_v17  ;;  %v916_v23 = vpop.f32.mrb[45].mxu0  ;;  %v1094_v24 = vsel %vm1030_vm0, %v1019_v18, 0.0  ;;  %v1076_v19 = vsel %vm1030_vm0, %v1013_v10, 0.0 }
 0x1ac   : > { %1095 = vadd.xlane.f32.xlu0 %v1094_v24  ;;  %v995_v24 = vld [vmem:[%s4942_s5 + $0xf0] sm:$0xff] }
 0x1ad   : > { %v694_v25 = vpop.f32.mrb[46].mxu1  ;;  %v1020_v26 = vmul.f32 %v987_v21, %v915_v22 }
 0x1ae   : > { %v919_v27 = vpop.f32.mrb[46].mxu0  ;;  %v696_v28 = vpop.f32.mrb[47].mxu1 }
 0x1af   : > { %v920_v30 = vadd.f32 %v919_v27, %v694_v25  ;;  %v921_v31 = vpop.f32.mrb[47].mxu0  ;;  %v1097_v33 = vsel %vm1030_vm0, %v1020_v26, 0.0 }
 0x1b0   : > { %1098 = vadd.xlane.f32.xlu1 %v1097_v33  ;;  %v996_v33 = vld [vmem:[%s4942_s5 + $0xf8] sm:$0xff] }
 0x1b1   : > { %v699_v34 = vpop.f32.mrb[48].mxu1  ;;  %v1021_v35 = vmul.f32 %v988_v29, %v920_v30 }
 0x1b2   : > { %v924_v36 = vpop.f32.mrb[48].mxu0  ;;  %v701_v37 = vpop.f32.mrb[49].mxu1 }
 0x1b3   : > { %v925_v39 = vadd.f32 %v924_v36, %v699_v34  ;;  %v926_v40 = vpop.f32.mrb[49].mxu0  ;;  %v1100_v41 = vsel %vm1030_vm0, %v1021_v35, 0.0 }
 0x1b4   : > { %1101 = vadd.xlane.f32.xlu0 %v1100_v41  ;;  %v4502_v40 = vmov 1966171168  }
 0x1b5   : > { %v704_v42 = vpop.f32.mrb[50].mxu1  ;;  %v1022_v43 = vmul.f32 %v989_v38, %v925_v39  ;;  %v186_v39 = vlaneseq  ;;  %v2188_v41 = vunpack.c.l.s4 %v4502_v40 }
 0x1b6   : > { %v929_v44 = vpop.f32.mrb[50].mxu0  ;;  %v706_v45 = vpop.f32.mrb[51].mxu1 }
 0x1b7   : > { %v930_v47 = vadd.f32 %v929_v44, %v704_v42  ;;  %v931_v48 = vpop.f32.mrb[51].mxu0  ;;  %v1103_v49 = vsel %vm1030_vm0, %v1022_v43, 0.0  ;;  %v5012_v42 = vshrl.u32 %v186_v39, 7  ;;  %v2189_v43 = vunpack.c.0.s8 %v2188_v41 }
 0x1b8   : > { %1104 = vadd.xlane.f32.xlu1 %v1103_v49  ;;  %vm5520_vm1 = vcmp.lt.s32.totalorder %v186_v39, 256 }
 0x1b9   : > { %v709_v0 = vpop.f32.mrb[52].mxu1  ;;  %v1023_v50 = vmul.f32 %v990_v46, %v930_v47  ;;  %v5015_v44 = vsub.s32 0, %v5012_v42  ;;  %v5018_v45 = vsub.s32 1, %v5012_v42  ;;  %v5021_v46 = vsub.s32 2, %v5012_v42 }
 0x1ba   : > { %v934_v8 = vpop.f32.mrb[52].mxu0  ;;  %v711_v51 = vpop.f32.mrb[53].mxu1  ;;  %v5024_v47 = vsub.s32 3, %v5012_v42  ;;  %v5027_v48 = vsub.s32 4, %v5012_v42  ;;  %v5030_v49 = vsub.s32 5, %v5012_v42 }
 0x1bb   : > { %v935_v53 = vadd.f32 %v934_v8, %v709_v0  ;;  %v936_v11 = vpop.f32.mrb[53].mxu0  ;;  %v1106_v54 = vsel %vm1030_vm0, %v1023_v50, 0.0  ;;  %v5033_v0 = vsub.s32 6, %v5012_v42  ;;  %v5036_v50 = vsub.s32 7, %v5012_v42 }
 0x1bc   : > { %1107 = vadd.xlane.f32.xlu0 %v1106_v54  ;;  %v5039_v51 = vsub.s32 %v2189_v43, %v5012_v42 }
 0x1bd   : > { %v714_v55 = vpop.f32.mrb[54].mxu1  ;;  %v1024_v56 = vmul.f32 %v991_v52, %v935_v53 }
 0x1be   : > { %v939_v57 = vpop.f32.mrb[54].mxu0  ;;  %v716_v58 = vpop.f32.mrb[55].mxu1 }
 0x1bf   : > { %v940_v60 = vadd.f32 %v939_v57, %v714_v55  ;;  %v941_v61 = vpop.f32.mrb[55].mxu0  ;;  %v1109_v62 = vsel %vm1030_vm0, %v1024_v56, 0.0 }
 0x1c0   : > { %1110 = vadd.xlane.f32.xlu1 %v1109_v62 }
 0x1c1   : > { %v719_v1 = vpop.f32.mrb[56].mxu1  ;;  %v1025_v2 = vmul.f32 %v992_v59, %v940_v60 }
 0x1c2   : > { %v944_v3 = vpop.f32.mrb[56].mxu0  ;;  %v721_v4 = vpop.f32.mrb[57].mxu1 }
 0x1c3   : > { %v945_v6 = vadd.f32 %v944_v3, %v719_v1  ;;  %v946_v7 = vpop.f32.mrb[57].mxu0  ;;  %v1112_v9 = vsel %vm1030_vm0, %v1025_v2, 0.0 }
 0x1c4   : > { %1113 = vadd.xlane.f32.xlu0 %v1112_v9 }
 0x1c5   : > { %v724_v12 = vpop.f32.mrb[58].mxu1  ;;  %v1026_v13 = vmul.f32 %v993_v5, %v945_v6 }
 0x1c6   : > { %v949_v14 = vpop.f32.mrb[58].mxu0  ;;  %v726_v15 = vpop.f32.mrb[59].mxu1 }
 0x1c7   : > { %v950_v17 = vadd.f32 %v949_v14, %v724_v12  ;;  %v951_v18 = vpop.f32.mrb[59].mxu0  ;;  %v1115_v20 = vsel %vm1030_vm0, %v1026_v13, 0.0 }
 0x1c8   : > { %1077 = vadd.xlane.f32.xlu0 %v1076_v19  ;;  %1116 = vadd.xlane.f32.xlu1 %v1115_v20 }
 0x1c9   : > { %v729_v21 = vpop.f32.mrb[60].mxu1  ;;  %v1027_v22 = vmul.f32 %v994_v16, %v950_v17 }
 0x1ca   : > { %v954_v23 = vpop.f32.mrb[60].mxu0  ;;  %v731_v32 = vpop.f32.mrb[61].mxu1 }
 0x1cb   : > { %v955_v25 = vadd.f32 %v954_v23, %v729_v21  ;;  %v956_v26 = vpop.f32.mrb[61].mxu0  ;;  %v1118_v27 = vsel %vm1030_vm0, %v1027_v22, 0.0 }
 0x1cc   : > { %1119 = vadd.xlane.f32.xlu1 %v1118_v27 }
 0x1cd   : > { %v734_v28 = vpop.f32.mrb[62].mxu1  ;;  %v1028_v29 = vmul.f32 %v995_v24, %v955_v25 }
 0x1ce   : > { %v959_v30 = vpop.f32.mrb[62].mxu0  ;;  %v736_v31 = vpop.f32.mrb[63].mxu1 }
 0x1cf   : > { %v960_v34 = vadd.f32 %v959_v30, %v734_v28  ;;  %v961_v35 = vpop.f32.mrb[63].mxu0  ;;  %v1121_v36 = vsel %vm1030_vm0, %v1028_v29, 0.0 }
 0x1d0   : > { %1122 = vadd.xlane.f32.xlu1 %v1121_v36 }
 0x1d1   : > { %v1029_v37 = vmul.f32 %v996_v33, %v960_v34 }
 0x1d3   : > { %v1124_v38 = vsel %vm1030_vm0, %v1029_v37, 0.0  ;;  %vm3956_vm0 = vcmask 1048512  }
 0x1d4   : > { %1125 = vadd.xlane.f32.xlu1 %v1124_v38 }
 0x1e5   : > { %v1033_v8 = vpop.xlane.xlu0 %1032 }
 0x1e6   : > { %v1162_v52 = vrot.slane %v1033_v8, %v5015_v44  ;;  %v1166_v53 = vrot.slane %v1033_v8, %v5018_v45  ;;  %v1170_v11 = vrot.slane %v1033_v8, %v5021_v46  ;;  %v1174_v54 = vrot.slane %v1033_v8, %v5024_v47 }
 0x1e7   : > { %v1178_v55 = vrot.slane %v1033_v8, %v5027_v48  ;;  %v1182_v56 = vrot.slane %v1033_v8, %v5030_v49  ;;  %v1186_v57 = vrot.slane %v1033_v8, %v5033_v0  ;;  %v1190_v58 = vrot.slane %v1033_v8, %v5036_v50 }
 0x1e8   : > { %v2183_v59 = vcombine.low %v1162_v52, %v1166_v53  ;;  %v2184_v60 = vcombine.low %v1170_v11, %v1174_v54 }
 0x1e9   : > { %v1036_v61 = vpop.xlane.xlu0 %1035  ;;  %v2185_v62 = vcombine.low %v1178_v55, %v1182_v56  ;;  %v2186_v63 = vcombine.low %v1186_v57, %v1190_v58 }
 0x1ea   : > { %v2193_v1 = vrot.slane %v2183_v59, %v5039_v51  ;;  %v2200_v2 = vrot.slane %v2184_v60, %v5039_v51  ;;  %v1194_v3 = vrot.slane %v1036_v61, %v5015_v44  ;;  %v1198_v4 = vrot.slane %v1036_v61, %v5018_v45 }
 0x1eb   : > { %v2207_v5 = vrot.slane %v2185_v62, %v5039_v51  ;;  %v2214_v6 = vrot.slane %v2186_v63, %v5039_v51  ;;  %v1202_v7 = vrot.slane %v1036_v61, %v5021_v46  ;;  %v1206_v9 = vrot.slane %v1036_v61, %v5024_v47 }
 0x1ec   : > { %v2215_v10 = vcombine.low %v2193_v1, %v2200_v2  ;;  %v1210_v12 = vrot.slane %v1036_v61, %v5027_v48  ;;  %v1214_v13 = vrot.slane %v1036_v61, %v5030_v49  ;;  %v1218_v14 = vrot.slane %v1036_v61, %v5033_v0 }
 0x1ed   : > { %v1039_v15 = vpop.xlane.xlu1 %1038  ;;  %v2216_v16 = vcombine.low %v2207_v5, %v2214_v6  ;;  %v1222_v17 = vrot.slane %v1036_v61, %v5036_v50  ;;  %v2232_v18 = vcombine.low %v1194_v3, %v1198_v4  ;;  %v2233_v19 = vcombine.low %v1202_v7, %v1206_v9 }
 0x1ee   : > { %v2223_v20 = vrot.slane %v2215_v10, %v5039_v51  ;;  %v2234_v21 = vcombine.low %v1210_v12, %v1214_v13  ;;  %v1226_v22 = vrot.slane %v1039_v15, %v5015_v44  ;;  %v1230_v23 = vrot.slane %v1039_v15, %v5018_v45 }
 0x1ef   : > { %v2230_v32 = vrot.slane %v2216_v16, %v5039_v51  ;;  %v2235_v24 = vcombine.low %v1218_v14, %v1222_v17  ;;  %v2242_v25 = vrot.slane %v2232_v18, %v5039_v51  ;;  %v2249_v26 = vrot.slane %v2233_v19, %v5039_v51 }
 0x1f0   : > { %v2256_v27 = vrot.slane %v2234_v21, %v5039_v51  ;;  %v1234_v28 = vrot.slane %v1039_v15, %v5021_v46  ;;  %v1238_v29 = vrot.slane %v1039_v15, %v5024_v47  ;;  %v1242_v30 = vrot.slane %v1039_v15, %v5027_v48 }
 0x1f1   : > { %v1042_v31 = vpop.xlane.xlu1 %1041  ;;  %v2231_v33 = vcombine.low %v2223_v20, %v2230_v32  ;;  %v2263_v34 = vrot.slane %v2235_v24, %v5039_v51  ;;  %v2264_v35 = vcombine.low %v2242_v25, %v2249_v26  ;;  %v1246_v36 = vrot.slane %v1039_v15, %v5030_v49 }
 0x1f2   : > { %v1250_v37 = vrot.slane %v1039_v15, %v5033_v0  ;;  %v1254_v38 = vrot.slane %v1039_v15, %v5036_v50  ;;  %v2281_v40 = vcombine.low %v1226_v22, %v1230_v23  ;;  %v2282_v41 = vcombine.low %v1234_v28, %v1238_v29 }
 0x1f3   : > { %3752 = vperm.xlu0 %4381, %v2231_v33   ;;  %v2265_v43 = vcombine.low %v2256_v27, %v2263_v34  ;;  %v2272_v8 = vrot.slane %v2264_v35, %v5039_v51  ;;  %v2283_v52 = vcombine.low %v1242_v30, %v1246_v36  ;;  %v1258_v53 = vrot.slane %v1042_v31, %v5015_v44 }
 0x1f4   : > { %v2284_v11 = vcombine.low %v1250_v37, %v1254_v38  ;;  %v2291_v54 = vrot.slane %v2281_v40, %v5039_v51  ;;  %v2298_v55 = vrot.slane %v2282_v41, %v5039_v51  ;;  %v1262_v56 = vrot.slane %v1042_v31, %v5018_v45 }
 0x1f5   : > { %v2279_v57 = vrot.slane %v2265_v43, %v5039_v51  ;;  %v2305_v58 = vrot.slane %v2283_v52, %v5039_v51  ;;  %v1266_v59 = vrot.slane %v1042_v31, %v5021_v46  ;;  %v1270_v60 = vrot.slane %v1042_v31, %v5024_v47  ;;  %v1045_v61 = vpop.xlane.xlu0 %1044 }
 0x1f6   : > { %v2312_v62 = vrot.slane %v2284_v11, %v5039_v51  ;;  %v2313_v63 = vcombine.low %v2291_v54, %v2298_v55  ;;  %v1274_v1 = vrot.slane %v1042_v31, %v5027_v48  ;;  %v1278_v2 = vrot.slane %v1042_v31, %v5030_v49 }
 0x1f7   : > { %v2280_v3 = vcombine.low %v2272_v8, %v2279_v57  ;;  %v1282_v4 = vrot.slane %v1042_v31, %v5033_v0  ;;  %v1286_v5 = vrot.slane %v1042_v31, %v5036_v50  ;;  %v2330_v6 = vcombine.low %v1258_v53, %v1262_v56 }
 0x1f8   : > { %v2314_v7 = vcombine.low %v2305_v58, %v2312_v62  ;;  %v2321_v9 = vrot.slane %v2313_v63, %v5039_v51  ;;  %v2331_v10 = vcombine.low %v1266_v59, %v1270_v60  ;;  %v2332_v12 = vcombine.low %v1274_v1, %v1278_v2 }
 0x1f9   : > { %3755 = vperm.xlu1 %4382, %v2280_v3   ;;  %v2333_v13 = vcombine.low %v1282_v4, %v1286_v5  ;;  %v2340_v14 = vrot.slane %v2330_v6, %v5039_v51  ;;  %v1290_v15 = vrot.slane %v1045_v61, %v5015_v44  ;;  %v1294_v16 = vrot.slane %v1045_v61, %v5018_v45  ;;  %v1048_v21 = vpop.xlane.xlu1 %1047 }
 0x1fa   : > { %v2328_v17 = vrot.slane %v2314_v7, %v5039_v51  ;;  %v2347_v18 = vrot.slane %v2331_v10, %v5039_v51  ;;  %v2354_v19 = vrot.slane %v2332_v12, %v5039_v51  ;;  %v1298_v20 = vrot.slane %v1045_v61, %v5021_v46 }
 0x1fb   : > { %v2361_v22 = vrot.slane %v2333_v13, %v5039_v51  ;;  %v1302_v23 = vrot.slane %v1045_v61, %v5024_v47  ;;  %v1306_v32 = vrot.slane %v1045_v61, %v5027_v48  ;;  %v1310_v24 = vrot.slane %v1045_v61, %v5030_v49 }
 0x1fc   : > { %v2329_v25 = vcombine.low %v2321_v9, %v2328_v17  ;;  %v2362_v26 = vcombine.low %v2340_v14, %v2347_v18  ;;  %v1314_v27 = vrot.slane %v1045_v61, %v5033_v0  ;;  %v1318_v28 = vrot.slane %v1045_v61, %v5036_v50 }
 0x1fd   : > { %v2363_v29 = vcombine.low %v2354_v19, %v2361_v22  ;;  %v2379_v30 = vcombine.low %v1290_v15, %v1294_v16  ;;  %v2380_v31 = vcombine.low %v1298_v20, %v1302_v23  ;;  %v2381_v33 = vcombine.low %v1306_v32, %v1310_v24  ;;  %v1051_v8 = vpop.xlane.xlu0 %1050 }
 0x1fe   : > { %3758 = vperm.xlu1 %4382, %v2329_v25   ;;  %v2370_v34 = vrot.slane %v2362_v26, %v5039_v51  ;;  %v2382_v35 = vcombine.low %v1314_v27, %v1318_v28  ;;  %v1322_v36 = vrot.slane %v1048_v21, %v5015_v44  ;;  %v1326_v37 = vrot.slane %v1048_v21, %v5018_v45 }
 0x1ff   : > { %v2377_v38 = vrot.slane %v2363_v29, %v5039_v51  ;;  %v2389_v40 = vrot.slane %v2379_v30, %v5039_v51  ;;  %v2396_v41 = vrot.slane %v2380_v31, %v5039_v51  ;;  %v2403_v43 = vrot.slane %v2381_v33, %v5039_v51 }
 0x200   : > { %v2410_v52 = vrot.slane %v2382_v35, %v5039_v51  ;;  %v1330_v53 = vrot.slane %v1048_v21, %v5021_v46  ;;  %v1334_v11 = vrot.slane %v1048_v21, %v5024_v47  ;;  %v1338_v54 = vrot.slane %v1048_v21, %v5027_v48 }
 0x201   : > { %v2378_v55 = vcombine.low %v2370_v34, %v2377_v38  ;;  %v2411_v56 = vcombine.low %v2389_v40, %v2396_v41  ;;  %v1342_v57 = vrot.slane %v1048_v21, %v5030_v49  ;;  %v1346_v58 = vrot.slane %v1048_v21, %v5033_v0  ;;  %v1054_v9 = vpop.xlane.xlu1 %1053 }
 0x202   : > { %v2412_v59 = vcombine.low %v2403_v43, %v2410_v52  ;;  %v1350_v60 = vrot.slane %v1048_v21, %v5036_v50  ;;  %v2428_v61 = vcombine.low %v1322_v36, %v1326_v37  ;;  %v2429_v62 = vcombine.low %v1330_v53, %v1334_v11 }
 0x203   : > { %3761 = vperm.xlu1 %4382, %v2378_v55   ;;  %v2419_v63 = vrot.slane %v2411_v56, %v5039_v51  ;;  %v2430_v1 = vcombine.low %v1338_v54, %v1342_v57  ;;  %v1354_v2 = vrot.slane %v1051_v8, %v5015_v44  ;;  %v1358_v3 = vrot.slane %v1051_v8, %v5018_v45 }
 0x204   : > { %v2426_v4 = vrot.slane %v2412_v59, %v5039_v51  ;;  %v2431_v5 = vcombine.low %v1346_v58, %v1350_v60  ;;  %v2438_v6 = vrot.slane %v2428_v61, %v5039_v51  ;;  %v2445_v7 = vrot.slane %v2429_v62, %v5039_v51 }
 0x205   : > { %v2452_v10 = vrot.slane %v2430_v1, %v5039_v51  ;;  %v1362_v12 = vrot.slane %v1051_v8, %v5021_v46  ;;  %v1366_v13 = vrot.slane %v1051_v8, %v5024_v47  ;;  %v1370_v14 = vrot.slane %v1051_v8, %v5027_v48  ;;  %v1057_v35 = vpop.xlane.xlu0 %1056 }
 0x206   : > { %v2427_v15 = vcombine.low %v2419_v63, %v2426_v4  ;;  %v2459_v16 = vrot.slane %v2431_v5, %v5039_v51  ;;  %v2460_v17 = vcombine.low %v2438_v6, %v2445_v7  ;;  %v1374_v18 = vrot.slane %v1051_v8, %v5030_v49 }
 0x207   : > { %v1378_v19 = vrot.slane %v1051_v8, %v5033_v0  ;;  %v1382_v20 = vrot.slane %v1051_v8, %v5036_v50  ;;  %v2477_v21 = vcombine.low %v1354_v2, %v1358_v3  ;;  %v2478_v22 = vcombine.low %v1362_v12, %v1366_v13 }
 0x208   : > { %3764 = vperm.xlu1 %4382, %v2427_v15   ;;  %v2461_v23 = vcombine.low %v2452_v10, %v2459_v16  ;;  %v2468_v32 = vrot.slane %v2460_v17, %v5039_v51  ;;  %v2479_v24 = vcombine.low %v1370_v14, %v1374_v18  ;;  %v1386_v25 = vrot.slane %v1054_v9, %v5015_v44 }
 0x209   : > { %v2480_v26 = vcombine.low %v1378_v19, %v1382_v20  ;;  %v2487_v27 = vrot.slane %v2477_v21, %v5039_v51  ;;  %v2494_v28 = vrot.slane %v2478_v22, %v5039_v51  ;;  %v1390_v29 = vrot.slane %v1054_v9, %v5018_v45  ;;  %v1060_v1 = vpop.xlane.xlu1 %1059 }
 0x20a   : > { %v2475_v30 = vrot.slane %v2461_v23, %v5039_v51  ;;  %v2501_v31 = vrot.slane %v2479_v24, %v5039_v51  ;;  %v1394_v33 = vrot.slane %v1054_v9, %v5021_v46  ;;  %v1398_v34 = vrot.slane %v1054_v9, %v5024_v47 }
 0x20b   : > { %v2508_v36 = vrot.slane %v2480_v26, %v5039_v51  ;;  %v2509_v37 = vcombine.low %v2487_v27, %v2494_v28  ;;  %v1402_v38 = vrot.slane %v1054_v9, %v5027_v48  ;;  %v1406_v40 = vrot.slane %v1054_v9, %v5030_v49 }
 0x20c   : > { %v2476_v41 = vcombine.low %v2468_v32, %v2475_v30  ;;  %v1410_v43 = vrot.slane %v1054_v9, %v5033_v0  ;;  %v1414_v8 = vrot.slane %v1054_v9, %v5036_v50  ;;  %v2526_v52 = vcombine.low %v1386_v25, %v1390_v29 }
 0x20d   : > { %v2510_v53 = vcombine.low %v2501_v31, %v2508_v36  ;;  %v2517_v11 = vrot.slane %v2509_v37, %v5039_v51  ;;  %v2527_v54 = vcombine.low %v1394_v33, %v1398_v34  ;;  %v2528_v55 = vcombine.low %v1402_v38, %v1406_v40  ;;  %v1063_v32 = vpop.xlane.xlu0 %1062 }
 0x20e   : > { %3767 = vperm.xlu1 %4382, %v2476_v41   ;;  %v2529_v56 = vcombine.low %v1410_v43, %v1414_v8  ;;  %v2536_v57 = vrot.slane %v2526_v52, %v5039_v51  ;;  %v1418_v58 = vrot.slane %v1057_v35, %v5015_v44  ;;  %v1422_v59 = vrot.slane %v1057_v35, %v5018_v45 }
 0x20f   : > { %v2524_v60 = vrot.slane %v2510_v53, %v5039_v51  ;;  %v2543_v61 = vrot.slane %v2527_v54, %v5039_v51  ;;  %v2550_v62 = vrot.slane %v2528_v55, %v5039_v51  ;;  %v1426_v63 = vrot.slane %v1057_v35, %v5021_v46 }
 0x210   : > { %v2557_v2 = vrot.slane %v2529_v56, %v5039_v51  ;;  %v1430_v3 = vrot.slane %v1057_v35, %v5024_v47  ;;  %v1434_v4 = vrot.slane %v1057_v35, %v5027_v48  ;;  %v1438_v5 = vrot.slane %v1057_v35, %v5030_v49 }
 0x211   : > { %v2525_v6 = vcombine.low %v2517_v11, %v2524_v60  ;;  %v2558_v7 = vcombine.low %v2536_v57, %v2543_v61  ;;  %v1442_v9 = vrot.slane %v1057_v35, %v5033_v0  ;;  %v1446_v10 = vrot.slane %v1057_v35, %v5036_v50  ;;  %v1066_v11 = vpop.xlane.xlu1 %1065 }
 0x212   : > { %v2559_v12 = vcombine.low %v2550_v62, %v2557_v2  ;;  %v2575_v13 = vcombine.low %v1418_v58, %v1422_v59  ;;  %v2576_v14 = vcombine.low %v1426_v63, %v1430_v3  ;;  %v2577_v15 = vcombine.low %v1434_v4, %v1438_v5 }
 0x213   : > { %3770 = vperm.xlu1 %4382, %v2525_v6   ;;  %v2566_v16 = vrot.slane %v2558_v7, %v5039_v51  ;;  %v2578_v17 = vcombine.low %v1442_v9, %v1446_v10  ;;  %v1450_v18 = vrot.slane %v1060_v1, %v5015_v44  ;;  %v1454_v19 = vrot.slane %v1060_v1, %v5018_v45 }
 0x214   : > { %v2573_v20 = vrot.slane %v2559_v12, %v5039_v51  ;;  %v2585_v21 = vrot.slane %v2575_v13, %v5039_v51  ;;  %v2592_v22 = vrot.slane %v2576_v14, %v5039_v51  ;;  %v2599_v23 = vrot.slane %v2577_v15, %v5039_v51 }
 0x215   : > { %v2606_v24 = vrot.slane %v2578_v17, %v5039_v51  ;;  %v1458_v25 = vrot.slane %v1060_v1, %v5021_v46  ;;  %v1462_v26 = vrot.slane %v1060_v1, %v5024_v47  ;;  %v1466_v27 = vrot.slane %v1060_v1, %v5027_v48  ;;  %v5179_v54 = vpop.xlane.xlu0 %1068 }
 0x216   : > { %v2574_v28 = vcombine.low %v2566_v16, %v2573_v20  ;;  %v2607_v29 = vcombine.low %v2585_v21, %v2592_v22  ;;  %v1470_v30 = vrot.slane %v1060_v1, %v5030_v49  ;;  %v1474_v31 = vrot.slane %v1060_v1, %v5033_v0 }
 0x217   : > { %v2608_v33 = vcombine.low %v2599_v23, %v2606_v24  ;;  %v1478_v34 = vrot.slane %v1060_v1, %v5036_v50  ;;  %v2624_v35 = vcombine.low %v1450_v18, %v1454_v19  ;;  %v2625_v36 = vcombine.low %v1458_v25, %v1462_v26 }
 0x218   : > { %3773 = vperm.xlu1 %4382, %v2574_v28   ;;  %v2615_v37 = vrot.slane %v2607_v29, %v5039_v51  ;;  %v2626_v38 = vcombine.low %v1466_v27, %v1470_v30  ;;  %v1482_v40 = vrot.slane %v1063_v32, %v5015_v44  ;;  %v1486_v41 = vrot.slane %v1063_v32, %v5018_v45 }
 0x219   : > { %v2622_v43 = vrot.slane %v2608_v33, %v5039_v51  ;;  %v2627_v8 = vcombine.low %v1474_v31, %v1478_v34  ;;  %v2634_v52 = vrot.slane %v2624_v35, %v5039_v51  ;;  %v2641_v53 = vrot.slane %v2625_v36, %v5039_v51  ;;  %v5198_v18 = vpop.xlane.xlu0 %1071 }
 0x21a   : > { %v2648_v55 = vrot.slane %v2626_v38, %v5039_v51  ;;  %v1490_v56 = vrot.slane %v1063_v32, %v5021_v46  ;;  %v1494_v57 = vrot.slane %v1063_v32, %v5024_v47  ;;  %v1498_v58 = vrot.slane %v1063_v32, %v5027_v48 }
 0x21b   : > { %v2623_v59 = vcombine.low %v2615_v37, %v2622_v43  ;;  %v2655_v60 = vrot.slane %v2627_v8, %v5039_v51  ;;  %v2656_v61 = vcombine.low %v2634_v52, %v2641_v53  ;;  %v1502_v62 = vrot.slane %v1063_v32, %v5030_v49 }
 0x21c   : > { %v1506_v63 = vrot.slane %v1063_v32, %v5033_v0  ;;  %v1510_v1 = vrot.slane %v1063_v32, %v5036_v50  ;;  %v2673_v2 = vcombine.low %v1482_v40, %v1486_v41  ;;  %v2674_v3 = vcombine.low %v1490_v56, %v1494_v57 }
 0x21d   : > { %3776 = vperm.xlu1 %4382, %v2623_v59   ;;  %v2657_v4 = vcombine.low %v2648_v55, %v2655_v60  ;;  %v2664_v5 = vrot.slane %v2656_v61, %v5039_v51  ;;  %v2675_v6 = vcombine.low %v1498_v58, %v1502_v62  ;;  %v1514_v7 = vrot.slane %v1066_v11, %v5015_v44 }
 0x21e   : > { %v2676_v9 = vcombine.low %v1506_v63, %v1510_v1  ;;  %v2683_v10 = vrot.slane %v2673_v2, %v5039_v51  ;;  %v2690_v12 = vrot.slane %v2674_v3, %v5039_v51  ;;  %v1518_v13 = vrot.slane %v1066_v11, %v5018_v45 }
 0x21f   : > { %v2671_v14 = vrot.slane %v2657_v4, %v5039_v51  ;;  %v2697_v15 = vrot.slane %v2675_v6, %v5039_v51  ;;  %v1522_v16 = vrot.slane %v1066_v11, %v5021_v46  ;;  %v1526_v17 = vrot.slane %v1066_v11, %v5024_v47 }
 0x220   : > { %v2704_v19 = vrot.slane %v2676_v9, %v5039_v51  ;;  %v2705_v20 = vcombine.low %v2683_v10, %v2690_v12  ;;  %v1530_v21 = vrot.slane %v1066_v11, %v5027_v48  ;;  %v1534_v22 = vrot.slane %v1066_v11, %v5030_v49 }
 0x221   : > { %v2672_v23 = vcombine.low %v2664_v5, %v2671_v14  ;;  %v1538_v32 = vrot.slane %v1066_v11, %v5033_v0  ;;  %v1542_v24 = vrot.slane %v1066_v11, %v5036_v50  ;;  %v2722_v25 = vcombine.low %v1514_v7, %v1518_v13  ;;  %v5223_v11 = vpop.xlane.xlu0 %1074 }
 0x222   : > { %v2706_v26 = vcombine.low %v2697_v15, %v2704_v19  ;;  %v2713_v27 = vrot.slane %v2705_v20, %v5039_v51  ;;  %v2723_v28 = vcombine.low %v1522_v16, %v1526_v17  ;;  %v2724_v29 = vcombine.low %v1530_v21, %v1534_v22 }
 0x223   : > { %3779 = vperm.xlu1 %4382, %v2672_v23   ;;  %v2725_v30 = vcombine.low %v1538_v32, %v1542_v24  ;;  %v2732_v31 = vrot.slane %v2722_v25, %v5039_v51  ;;  %v1546_v33 = vrot.slane %v5179_v54, %v5015_v44  ;;  %v1550_v34 = vrot.slane %v5179_v54, %v5018_v45 }
 0x224   : > { %v2720_v35 = vrot.slane %v2706_v26, %v5039_v51  ;;  %v2739_v36 = vrot.slane %v2723_v28, %v5039_v51  ;;  %v2746_v37 = vrot.slane %v2724_v29, %v5039_v51  ;;  %v1554_v38 = vrot.slane %v5179_v54, %v5021_v46 }
 0x225   : > { %v2753_v40 = vrot.slane %v2725_v30, %v5039_v51  ;;  %v1558_v41 = vrot.slane %v5179_v54, %v5024_v47  ;;  %v1562_v43 = vrot.slane %v5179_v54, %v5027_v48  ;;  %v1566_v8 = vrot.slane %v5179_v54, %v5030_v49  ;;  %v1081_v52 = vpop.xlane.xlu1 %1080 }
 0x226   : > { %v2721_v53 = vcombine.low %v2713_v27, %v2720_v35  ;;  %v2754_v55 = vcombine.low %v2732_v31, %v2739_v36  ;;  %v1570_v56 = vrot.slane %v5179_v54, %v5033_v0  ;;  %v1574_v57 = vrot.slane %v5179_v54, %v5036_v50 }
 0x227   : > { %v2755_v58 = vcombine.low %v2746_v37, %v2753_v40  ;;  %v2771_v59 = vcombine.low %v1546_v33, %v1550_v34  ;;  %v2772_v60 = vcombine.low %v1554_v38, %v1558_v41  ;;  %v2773_v61 = vcombine.low %v1562_v43, %v1566_v8 }
 0x228   : > { %3782 = vperm.xlu1 %4382, %v2721_v53   ;;  %v2762_v62 = vrot.slane %v2754_v55, %v5039_v51  ;;  %v2774_v63 = vcombine.low %v1570_v56, %v1574_v57  ;;  %v1674_v1 = vrot.slane %v1081_v52, %v5015_v44  ;;  %v1678_v2 = vrot.slane %v1081_v52, %v5018_v45 }
 0x229   : > { %v2769_v3 = vrot.slane %v2755_v58, %v5039_v51  ;;  %v2781_v4 = vrot.slane %v2771_v59, %v5039_v51  ;;  %v2788_v5 = vrot.slane %v2772_v60, %v5039_v51  ;;  %v2795_v54 = vrot.slane %v2773_v61, %v5039_v51  ;;  %v1084_v7 = vpop.xlane.xlu0 %1083 }
 0x22a   : > { %v2802_v6 = vrot.slane %v2774_v63, %v5039_v51  ;;  %v1682_v9 = vrot.slane %v1081_v52, %v5021_v46  ;;  %v1686_v10 = vrot.slane %v1081_v52, %v5024_v47  ;;  %v1690_v12 = vrot.slane %v1081_v52, %v5027_v48 }
 0x22b   : > { %v2770_v13 = vcombine.low %v2762_v62, %v2769_v3  ;;  %v2803_v14 = vcombine.low %v2781_v4, %v2788_v5  ;;  %v1694_v15 = vrot.slane %v1081_v52, %v5030_v49  ;;  %v1698_v16 = vrot.slane %v1081_v52, %v5033_v0 }
 0x22c   : > { %v2804_v17 = vcombine.low %v2795_v54, %v2802_v6  ;;  %v1702_v19 = vrot.slane %v1081_v52, %v5036_v50  ;;  %v2967_v20 = vcombine.low %v1674_v1, %v1678_v2  ;;  %v2968_v21 = vcombine.low %v1682_v9, %v1686_v10 }
 0x22d   : > { %3785 = vperm.xlu1 %4382, %v2770_v13   ;;  %v2811_v22 = vrot.slane %v2803_v14, %v5039_v51  ;;  %v2969_v23 = vcombine.low %v1690_v12, %v1694_v15  ;;  %v1706_v32 = vrot.slane %v1084_v7, %v5015_v44  ;;  %v1710_v24 = vrot.slane %v1084_v7, %v5018_v45  ;;  %v1087_v29 = vpop.xlane.xlu1 %1086 }
 0x22e   : > { %v2818_v25 = vrot.slane %v2804_v17, %v5039_v51  ;;  %v2970_v26 = vcombine.low %v1698_v16, %v1702_v19  ;;  %v2977_v27 = vrot.slane %v2967_v20, %v5039_v51  ;;  %v2984_v28 = vrot.slane %v2968_v21, %v5039_v51 }
 0x22f   : > { %v2991_v30 = vrot.slane %v2969_v23, %v5039_v51  ;;  %v1714_v31 = vrot.slane %v1084_v7, %v5021_v46  ;;  %v1718_v33 = vrot.slane %v1084_v7, %v5024_v47  ;;  %v1722_v34 = vrot.slane %v1084_v7, %v5027_v48 }
 0x230   : > { %v2819_v35 = vcombine.low %v2811_v22, %v2818_v25  ;;  %v2998_v36 = vrot.slane %v2970_v26, %v5039_v51  ;;  %v2999_v37 = vcombine.low %v2977_v27, %v2984_v28  ;;  %v1726_v38 = vrot.slane %v1084_v7, %v5030_v49 }
 0x231   : > { %v1730_v40 = vrot.slane %v1084_v7, %v5033_v0  ;;  %v1734_v41 = vrot.slane %v1084_v7, %v5036_v50  ;;  %v3016_v43 = vcombine.low %v1706_v32, %v1710_v24  ;;  %v3017_v8 = vcombine.low %v1714_v31, %v1718_v33  ;;  %v1090_v2 = vpop.xlane.xlu0 %1089 }
 0x232   : > { %3788 = vperm.xlu1 %4382, %v2819_v35   ;;  %v3000_v52 = vcombine.low %v2991_v30, %v2998_v36  ;;  %v3007_v53 = vrot.slane %v2999_v37, %v5039_v51  ;;  %v3018_v55 = vcombine.low %v1722_v34, %v1726_v38  ;;  %v1738_v56 = vrot.slane %v1087_v29, %v5015_v44 }
 0x233   : > { %v3019_v57 = vcombine.low %v1730_v40, %v1734_v41  ;;  %v3026_v58 = vrot.slane %v3016_v43, %v5039_v51  ;;  %v3033_v59 = vrot.slane %v3017_v8, %v5039_v51  ;;  %v1742_v60 = vrot.slane %v1087_v29, %v5018_v45 }
 0x234   : > { %v3014_v61 = vrot.slane %v3000_v52, %v5039_v51  ;;  %v3040_v62 = vrot.slane %v3018_v55, %v5039_v51  ;;  %v1746_v63 = vrot.slane %v1087_v29, %v5021_v46  ;;  %v1750_v1 = vrot.slane %v1087_v29, %v5024_v47 }
 0x235   : > { %v3047_v3 = vrot.slane %v3019_v57, %v5039_v51  ;;  %v3048_v4 = vcombine.low %v3026_v58, %v3033_v59  ;;  %v1754_v5 = vrot.slane %v1087_v29, %v5027_v48  ;;  %v1758_v54 = vrot.slane %v1087_v29, %v5030_v49  ;;  %v1093_v24 = vpop.xlane.xlu1 %1092 }
 0x236   : > { %v3015_v6 = vcombine.low %v3007_v53, %v3014_v61  ;;  %v1762_v7 = vrot.slane %v1087_v29, %v5033_v0  ;;  %v1766_v9 = vrot.slane %v1087_v29, %v5036_v50  ;;  %v3065_v10 = vcombine.low %v1738_v56, %v1742_v60 }
 0x237   : > { %v3049_v12 = vcombine.low %v3040_v62, %v3047_v3  ;;  %v3056_v13 = vrot.slane %v3048_v4, %v5039_v51  ;;  %v3066_v14 = vcombine.low %v1746_v63, %v1750_v1  ;;  %v3067_v15 = vcombine.low %v1754_v5, %v1758_v54 }
 0x238   : > { %3800 = vperm.xlu1 %4382, %v3015_v6   ;;  %v3068_v16 = vcombine.low %v1762_v7, %v1766_v9  ;;  %v3075_v17 = vrot.slane %v3065_v10, %v5039_v51  ;;  %v1770_v19 = vrot.slane %v1090_v2, %v5015_v44  ;;  %v1774_v20 = vrot.slane %v1090_v2, %v5018_v45 }
 0x239   : > { %v3063_v21 = vrot.slane %v3049_v12, %v5039_v51  ;;  %v3082_v22 = vrot.slane %v3066_v14, %v5039_v51  ;;  %v3089_v23 = vrot.slane %v3067_v15, %v5039_v51  ;;  %v1778_v32 = vrot.slane %v1090_v2, %v5021_v46  ;;  %v1096_v56 = vpop.xlane.xlu0 %1095 }
 0x23a   : > { %v3096_v25 = vrot.slane %v3068_v16, %v5039_v51  ;;  %v1782_v26 = vrot.slane %v1090_v2, %v5024_v47  ;;  %v1786_v27 = vrot.slane %v1090_v2, %v5027_v48  ;;  %v1790_v28 = vrot.slane %v1090_v2, %v5030_v49 }
 0x23b   : > { %v3064_v29 = vcombine.low %v3056_v13, %v3063_v21  ;;  %v3097_v30 = vcombine.low %v3075_v17, %v3082_v22  ;;  %v1794_v31 = vrot.slane %v1090_v2, %v5033_v0  ;;  %v1798_v33 = vrot.slane %v1090_v2, %v5036_v50 }
 0x23c   : > { %v3098_v34 = vcombine.low %v3089_v23, %v3096_v25  ;;  %v3114_v35 = vcombine.low %v1770_v19, %v1774_v20  ;;  %v3115_v36 = vcombine.low %v1778_v32, %v1782_v26  ;;  %v3116_v37 = vcombine.low %v1786_v27, %v1790_v28 }
 0x23d   : > { %3803 = vperm.xlu1 %4382, %v3064_v29   ;;  %v3105_v38 = vrot.slane %v3097_v30, %v5039_v51  ;;  %v3117_v40 = vcombine.low %v1794_v31, %v1798_v33  ;;  %v1802_v41 = vrot.slane %v1093_v24, %v5015_v44  ;;  %v1806_v43 = vrot.slane %v1093_v24, %v5018_v45  ;;  %v1099_v15 = vpop.xlane.xlu1 %1098 }
 0x23e   : > { %v3112_v8 = vrot.slane %v3098_v34, %v5039_v51  ;;  %v3124_v52 = vrot.slane %v3114_v35, %v5039_v51  ;;  %v3131_v53 = vrot.slane %v3115_v36, %v5039_v51  ;;  %v3138_v55 = vrot.slane %v3116_v37, %v5039_v51 }
 0x23f   : > { %v3145_v57 = vrot.slane %v3117_v40, %v5039_v51  ;;  %v1810_v58 = vrot.slane %v1093_v24, %v5021_v46  ;;  %v1814_v59 = vrot.slane %v1093_v24, %v5024_v47  ;;  %v1818_v60 = vrot.slane %v1093_v24, %v5027_v48 }
 0x240   : > { %v3113_v61 = vcombine.low %v3105_v38, %v3112_v8  ;;  %v3146_v62 = vcombine.low %v3124_v52, %v3131_v53  ;;  %v1822_v63 = vrot.slane %v1093_v24, %v5030_v49  ;;  %v1826_v1 = vrot.slane %v1093_v24, %v5033_v0 }
 0x241   : > { %v3147_v2 = vcombine.low %v3138_v55, %v3145_v57  ;;  %v1830_v3 = vrot.slane %v1093_v24, %v5036_v50  ;;  %v3163_v4 = vcombine.low %v1802_v41, %v1806_v43  ;;  %v3164_v5 = vcombine.low %v1810_v58, %v1814_v59 }
 0x242   : > { %3806 = vperm.xlu0 %4381, %v3113_v61   ;;  %v3154_v54 = vrot.slane %v3146_v62, %v5039_v51  ;;  %v3165_v6 = vcombine.low %v1818_v60, %v1822_v63  ;;  %v1834_v7 = vrot.slane %v1096_v56, %v5015_v44  ;;  %v1838_v9 = vrot.slane %v1096_v56, %v5018_v45 }
 0x243   : > { %v3161_v10 = vrot.slane %v3147_v2, %v5039_v51  ;;  %v3166_v12 = vcombine.low %v1826_v1, %v1830_v3  ;;  %v3173_v13 = vrot.slane %v3163_v4, %v5039_v51  ;;  %v3180_v14 = vrot.slane %v3164_v5, %v5039_v51 }
 0x244   : > { %v3187_v16 = vrot.slane %v3165_v6, %v5039_v51  ;;  %v1842_v17 = vrot.slane %v1096_v56, %v5021_v46  ;;  %v1846_v19 = vrot.slane %v1096_v56, %v5024_v47  ;;  %v1850_v20 = vrot.slane %v1096_v56, %v5027_v48 }
 0x245   : > { %v3162_v21 = vcombine.low %v3154_v54, %v3161_v10  ;;  %v3194_v22 = vrot.slane %v3166_v12, %v5039_v51  ;;  %v3195_v23 = vcombine.low %v3173_v13, %v3180_v14  ;;  %v1854_v32 = vrot.slane %v1096_v56, %v5030_v49 }
 0x246   : > { %v1858_v24 = vrot.slane %v1096_v56, %v5033_v0  ;;  %v1862_v25 = vrot.slane %v1096_v56, %v5036_v50  ;;  %v3212_v26 = vcombine.low %v1834_v7, %v1838_v9  ;;  %v3213_v27 = vcombine.low %v1842_v17, %v1846_v19  ;;  %v1102_v7 = vpop.xlane.xlu0 %1101 }
 0x247   : > { %3809 = vperm.xlu1 %4382, %v3162_v21   ;;  %v3196_v28 = vcombine.low %v3187_v16, %v3194_v22  ;;  %v3203_v29 = vrot.slane %v3195_v23, %v5039_v51  ;;  %v3214_v30 = vcombine.low %v1850_v20, %v1854_v32  ;;  %v1866_v31 = vrot.slane %v1099_v15, %v5015_v44 }
 0x248   : > { %v3215_v33 = vcombine.low %v1858_v24, %v1862_v25  ;;  %v3222_v34 = vrot.slane %v3212_v26, %v5039_v51  ;;  %v3229_v35 = vrot.slane %v3213_v27, %v5039_v51  ;;  %v1870_v36 = vrot.slane %v1099_v15, %v5018_v45 }
 0x249   : > { %v3210_v37 = vrot.slane %v3196_v28, %v5039_v51  ;;  %v3236_v38 = vrot.slane %v3214_v30, %v5039_v51  ;;  %v1874_v40 = vrot.slane %v1099_v15, %v5021_v46  ;;  %v1878_v41 = vrot.slane %v1099_v15, %v5024_v47 }
 0x24a   : > { %v3243_v43 = vrot.slane %v3215_v33, %v5039_v51  ;;  %v3244_v8 = vcombine.low %v3222_v34, %v3229_v35  ;;  %v1882_v52 = vrot.slane %v1099_v15, %v5027_v48  ;;  %v1886_v53 = vrot.slane %v1099_v15, %v5030_v49 }
 0x24b   : > { %v3211_v55 = vcombine.low %v3203_v29, %v3210_v37  ;;  %v1890_v56 = vrot.slane %v1099_v15, %v5033_v0  ;;  %v1894_v57 = vrot.slane %v1099_v15, %v5036_v50  ;;  %v3261_v58 = vcombine.low %v1866_v31, %v1870_v36 }
 0x24c   : > { %v3245_v59 = vcombine.low %v3236_v38, %v3243_v43  ;;  %v3252_v60 = vrot.slane %v3244_v8, %v5039_v51  ;;  %v3262_v61 = vcombine.low %v1874_v40, %v1878_v41  ;;  %v3263_v62 = vcombine.low %v1882_v52, %v1886_v53 }
 0x24d   : > { %3812 = vperm.xlu0 %4381, %v3211_v55   ;;  %v3264_v63 = vcombine.low %v1890_v56, %v1894_v57  ;;  %v3271_v1 = vrot.slane %v3261_v58, %v5039_v51  ;;  %v1578_v2 = vrot.slane %v5198_v18, %v5015_v44  ;;  %v1582_v3 = vrot.slane %v5198_v18, %v5018_v45 }
 0x24e   : > { %v3259_v4 = vrot.slane %v3245_v59, %v5039_v51  ;;  %v3278_v5 = vrot.slane %v3262_v61, %v5039_v51  ;;  %v3285_v54 = vrot.slane %v3263_v62, %v5039_v51  ;;  %v1586_v6 = vrot.slane %v5198_v18, %v5021_v46 }
 0x24f   : > { %v3292_v9 = vrot.slane %v3264_v63, %v5039_v51  ;;  %v1590_v10 = vrot.slane %v5198_v18, %v5024_v47  ;;  %v1594_v12 = vrot.slane %v5198_v18, %v5027_v48  ;;  %v1598_v13 = vrot.slane %v5198_v18, %v5030_v49 }
 0x250   : > { %v3260_v14 = vcombine.low %v3252_v60, %v3259_v4  ;;  %v3293_v15 = vcombine.low %v3271_v1, %v3278_v5  ;;  %v1602_v16 = vrot.slane %v5198_v18, %v5033_v0  ;;  %v1606_v17 = vrot.slane %v5198_v18, %v5036_v50  ;;  %v1105_v60 = vpop.xlane.xlu1 %1104 }
 0x251   : > { %v3294_v19 = vcombine.low %v3285_v54, %v3292_v9  ;;  %v2820_v20 = vcombine.low %v1578_v2, %v1582_v3  ;;  %v2821_v21 = vcombine.low %v1586_v6, %v1590_v10  ;;  %v2822_v22 = vcombine.low %v1594_v12, %v1598_v13 }
 0x252   : > { %3815 = vperm.xlu1 %4382, %v3260_v14   ;;  %v3301_v23 = vrot.slane %v3293_v15, %v5039_v51  ;;  %v2823_v32 = vcombine.low %v1602_v16, %v1606_v17  ;;  %v1898_v24 = vrot.slane %v1102_v7, %v5015_v44  ;;  %v1902_v25 = vrot.slane %v1102_v7, %v5018_v45 }
 0x253   : > { %v3308_v26 = vrot.slane %v3294_v19, %v5039_v51  ;;  %v2830_v27 = vrot.slane %v2820_v20, %v5039_v51  ;;  %v2837_v28 = vrot.slane %v2821_v21, %v5039_v51  ;;  %v2844_v18 = vrot.slane %v2822_v22, %v5039_v51 }
 0x254   : > { %v2851_v29 = vrot.slane %v2823_v32, %v5039_v51  ;;  %v1906_v30 = vrot.slane %v1102_v7, %v5021_v46  ;;  %v1910_v31 = vrot.slane %v1102_v7, %v5024_v47  ;;  %v1914_v33 = vrot.slane %v1102_v7, %v5027_v48 }
 0x255   : > { %v3309_v34 = vcombine.low %v3301_v23, %v3308_v26  ;;  %v2852_v35 = vcombine.low %v2830_v27, %v2837_v28  ;;  %v1918_v36 = vrot.slane %v1102_v7, %v5030_v49  ;;  %v1922_v37 = vrot.slane %v1102_v7, %v5033_v0  ;;  %v1108_v23 = vpop.xlane.xlu0 %1107 }
 0x256   : > { %v2853_v38 = vcombine.low %v2844_v18, %v2851_v29  ;;  %v1926_v40 = vrot.slane %v1102_v7, %v5036_v50  ;;  %v3310_v41 = vcombine.low %v1898_v24, %v1902_v25  ;;  %v3311_v43 = vcombine.low %v1906_v30, %v1910_v31 }
 0x257   : > { %3818 = vperm.xlu0 %4381, %v3309_v34   ;;  %v2860_v8 = vrot.slane %v2852_v35, %v5039_v51  ;;  %v3312_v52 = vcombine.low %v1914_v33, %v1918_v36  ;;  %v1610_v53 = vrot.slane %v5223_v11, %v5015_v44  ;;  %v1614_v55 = vrot.slane %v5223_v11, %v5018_v45 }
 0x258   : > { %v2867_v56 = vrot.slane %v2853_v38, %v5039_v51  ;;  %v3313_v57 = vcombine.low %v1922_v37, %v1926_v40  ;;  %v3320_v58 = vrot.slane %v3310_v41, %v5039_v51  ;;  %v3327_v59 = vrot.slane %v3311_v43, %v5039_v51 }
 0x259   : > { %v3334_v61 = vrot.slane %v3312_v52, %v5039_v51  ;;  %v1618_v62 = vrot.slane %v5223_v11, %v5021_v46  ;;  %v1622_v63 = vrot.slane %v5223_v11, %v5024_v47  ;;  %v1626_v1 = vrot.slane %v5223_v11, %v5027_v48  ;;  %v1111_v52 = vpop.xlane.xlu1 %1110 }
 0x25a   : > { %v2868_v2 = vcombine.low %v2860_v8, %v2867_v56  ;;  %v3341_v3 = vrot.slane %v3313_v57, %v5039_v51  ;;  %v3342_v4 = vcombine.low %v3320_v58, %v3327_v59  ;;  %v1630_v5 = vrot.slane %v5223_v11, %v5030_v49 }
 0x25b   : > { %v1634_v54 = vrot.slane %v5223_v11, %v5033_v0  ;;  %v1638_v6 = vrot.slane %v5223_v11, %v5036_v50  ;;  %v2869_v7 = vcombine.low %v1610_v53, %v1614_v55  ;;  %v2870_v9 = vcombine.low %v1618_v62, %v1622_v63 }
 0x25c   : > { %3791 = vperm.xlu1 %4382, %v2868_v2   ;;  %v3343_v10 = vcombine.low %v3334_v61, %v3341_v3  ;;  %v3350_v12 = vrot.slane %v3342_v4, %v5039_v51  ;;  %v2871_v13 = vcombine.low %v1626_v1, %v1630_v5  ;;  %v1930_v14 = vrot.slane %v1105_v60, %v5015_v44 }
 0x25d   : > { %v2872_v15 = vcombine.low %v1634_v54, %v1638_v6  ;;  %v2879_v16 = vrot.slane %v2869_v7, %v5039_v51  ;;  %v2886_v17 = vrot.slane %v2870_v9, %v5039_v51  ;;  %v1934_v19 = vrot.slane %v1105_v60, %v5018_v45 }
 0x25e   : > { %v3357_v20 = vrot.slane %v3343_v10, %v5039_v51  ;;  %v2893_v11 = vrot.slane %v2871_v13, %v5039_v51  ;;  %v1938_v21 = vrot.slane %v1105_v60, %v5021_v46  ;;  %v1942_v22 = vrot.slane %v1105_v60, %v5024_v47 }
 0x25f   : > { %v2900_v32 = vrot.slane %v2872_v15, %v5039_v51  ;;  %v2901_v24 = vcombine.low %v2879_v16, %v2886_v17  ;;  %v1946_v25 = vrot.slane %v1105_v60, %v5027_v48  ;;  %v1950_v26 = vrot.slane %v1105_v60, %v5030_v49 }
 0x260   : > { %v3358_v27 = vcombine.low %v3350_v12, %v3357_v20  ;;  %v1954_v28 = vrot.slane %v1105_v60, %v5033_v0  ;;  %v1958_v18 = vrot.slane %v1105_v60, %v5036_v50  ;;  %v3359_v29 = vcombine.low %v1930_v14, %v1934_v19  ;;  %v1114_v12 = vpop.xlane.xlu0 %1113 }
 0x261   : > { %v2902_v30 = vcombine.low %v2893_v11, %v2900_v32  ;;  %v2909_v31 = vrot.slane %v2901_v24, %v5039_v51  ;;  %v3360_v33 = vcombine.low %v1938_v21, %v1942_v22  ;;  %v3361_v34 = vcombine.low %v1946_v25, %v1950_v26 }
 0x262   : > { %3821 = vperm.xlu0 %4381, %v3358_v27   ;;  %v3362_v35 = vcombine.low %v1954_v28, %v1958_v18  ;;  %v3369_v36 = vrot.slane %v3359_v29, %v5039_v51  ;;  %v1962_v37 = vrot.slane %v1108_v23, %v5015_v44  ;;  %v1966_v38 = vrot.slane %v1108_v23, %v5018_v45 }
 0x263   : > { %v2916_v40 = vrot.slane %v2902_v30, %v5039_v51  ;;  %v3376_v41 = vrot.slane %v3360_v33, %v5039_v51  ;;  %v3383_v43 = vrot.slane %v3361_v34, %v5039_v51  ;;  %v1970_v8 = vrot.slane %v1108_v23, %v5021_v46 }
 0x264   : > { %v3390_v53 = vrot.slane %v3362_v35, %v5039_v51  ;;  %v1974_v55 = vrot.slane %v1108_v23, %v5024_v47  ;;  %v1978_v56 = vrot.slane %v1108_v23, %v5027_v48  ;;  %v1982_v57 = vrot.slane %v1108_v23, %v5030_v49 }
 0x265   : > { %v2917_v58 = vcombine.low %v2909_v31, %v2916_v40  ;;  %v3391_v59 = vcombine.low %v3369_v36, %v3376_v41  ;;  %v1986_v60 = vrot.slane %v1108_v23, %v5033_v0  ;;  %v1990_v61 = vrot.slane %v1108_v23, %v5036_v50  ;;  %v1117_v31 = vpop.xlane.xlu1 %1116 }
 0x266   : > { %v3392_v62 = vcombine.low %v3383_v43, %v3390_v53  ;;  %v3408_v63 = vcombine.low %v1962_v37, %v1966_v38  ;;  %v3409_v1 = vcombine.low %v1970_v8, %v1974_v55  ;;  %v3410_v2 = vcombine.low %v1978_v56, %v1982_v57 }
 0x267   : > { %3794 = vperm.xlu1 %4382, %v2917_v58   ;;  %v3399_v3 = vrot.slane %v3391_v59, %v5039_v51  ;;  %v3411_v4 = vcombine.low %v1986_v60, %v1990_v61  ;;  %v1994_v5 = vrot.slane %v1111_v52, %v5015_v44  ;;  %v1998_v54 = vrot.slane %v1111_v52, %v5018_v45 }
 0x268   : > { %v3406_v6 = vrot.slane %v3392_v62, %v5039_v51  ;;  %v3418_v7 = vrot.slane %v3408_v63, %v5039_v51  ;;  %v3425_v9 = vrot.slane %v3409_v1, %v5039_v51  ;;  %v3432_v10 = vrot.slane %v3410_v2, %v5039_v51 }
 0x269   : > { %v3439_v13 = vrot.slane %v3411_v4, %v5039_v51  ;;  %v2002_v14 = vrot.slane %v1111_v52, %v5021_v46  ;;  %v2006_v15 = vrot.slane %v1111_v52, %v5024_v47  ;;  %v2010_v16 = vrot.slane %v1111_v52, %v5027_v48  ;;  %v1078_v4 = vpop.xlane.xlu0 %1077 }
 0x26a   : > { %v3407_v17 = vcombine.low %v3399_v3, %v3406_v6  ;;  %v3440_v19 = vcombine.low %v3418_v7, %v3425_v9  ;;  %v2014_v20 = vrot.slane %v1111_v52, %v5030_v49  ;;  %v2018_v11 = vrot.slane %v1111_v52, %v5033_v0 }
 0x26b   : > { %v3441_v21 = vcombine.low %v3432_v10, %v3439_v13  ;;  %v2022_v22 = vrot.slane %v1111_v52, %v5036_v50  ;;  %v3457_v23 = vcombine.low %v1994_v5, %v1998_v54  ;;  %v3458_v32 = vcombine.low %v2002_v14, %v2006_v15 }
 0x26c   : > { %3824 = vperm.xlu0 %4381, %v3407_v17   ;;  %v3448_v24 = vrot.slane %v3440_v19, %v5039_v51  ;;  %v3459_v25 = vcombine.low %v2010_v16, %v2014_v20  ;;  %v2026_v26 = vrot.slane %v1114_v12, %v5015_v44  ;;  %v2030_v27 = vrot.slane %v1114_v12, %v5018_v45  ;;  %v1120_v19 = vpop.xlane.xlu1 %1119 }
 0x26d   : > { %v3455_v28 = vrot.slane %v3441_v21, %v5039_v51  ;;  %v3460_v18 = vcombine.low %v2018_v11, %v2022_v22  ;;  %v3467_v29 = vrot.slane %v3457_v23, %v5039_v51  ;;  %v3474_v30 = vrot.slane %v3458_v32, %v5039_v51 }
 0x26e   : > { %v3481_v33 = vrot.slane %v3459_v25, %v5039_v51  ;;  %v2034_v34 = vrot.slane %v1114_v12, %v5021_v46  ;;  %v2038_v35 = vrot.slane %v1114_v12, %v5024_v47  ;;  %v2042_v36 = vrot.slane %v1114_v12, %v5027_v48 }
 0x26f   : > { %v3456_v37 = vcombine.low %v3448_v24, %v3455_v28  ;;  %v3488_v38 = vrot.slane %v3460_v18, %v5039_v51  ;;  %v3489_v40 = vcombine.low %v3467_v29, %v3474_v30  ;;  %v2046_v41 = vrot.slane %v1114_v12, %v5030_v49 }
 0x270   : > { %v2050_v43 = vrot.slane %v1114_v12, %v5033_v0  ;;  %v2054_v8 = vrot.slane %v1114_v12, %v5036_v50  ;;  %v3506_v52 = vcombine.low %v2026_v26, %v2030_v27  ;;  %v3507_v53 = vcombine.low %v2034_v34, %v2038_v35 }
 0x271   : > { %3827 = vperm.xlu0 %4381, %v3456_v37   ;;  %v3490_v55 = vcombine.low %v3481_v33, %v3488_v38  ;;  %v3497_v56 = vrot.slane %v3489_v40, %v5039_v51  ;;  %v3508_v57 = vcombine.low %v2042_v36, %v2046_v41  ;;  %v2058_v58 = vrot.slane %v1117_v31, %v5015_v44 }
 0x272   : > { %v3509_v59 = vcombine.low %v2050_v43, %v2054_v8  ;;  %v3516_v60 = vrot.slane %v3506_v52, %v5039_v51  ;;  %v3523_v61 = vrot.slane %v3507_v53, %v5039_v51  ;;  %v2062_v62 = vrot.slane %v1117_v31, %v5018_v45  ;;  %v1123_v8 = vpop.xlane.xlu1 %1122 }
 0x273   : > { %v3504_v63 = vrot.slane %v3490_v55, %v5039_v51  ;;  %v3530_v1 = vrot.slane %v3508_v57, %v5039_v51  ;;  %v2066_v2 = vrot.slane %v1117_v31, %v5021_v46  ;;  %v2070_v3 = vrot.slane %v1117_v31, %v5024_v47 }
 0x274   : > { %v3537_v5 = vrot.slane %v3509_v59, %v5039_v51  ;;  %v3538_v54 = vcombine.low %v3516_v60, %v3523_v61  ;;  %v2074_v6 = vrot.slane %v1117_v31, %v5027_v48  ;;  %v2078_v7 = vrot.slane %v1117_v31, %v5030_v49 }
 0x275   : > { %v3505_v9 = vcombine.low %v3497_v56, %v3504_v63  ;;  %v2082_v10 = vrot.slane %v1117_v31, %v5033_v0  ;;  %v2086_v12 = vrot.slane %v1117_v31, %v5036_v50  ;;  %v3555_v13 = vcombine.low %v2058_v58, %v2062_v62 }
 0x276   : > { %v3539_v14 = vcombine.low %v3530_v1, %v3537_v5  ;;  %v3546_v15 = vrot.slane %v3538_v54, %v5039_v51  ;;  %v3556_v16 = vcombine.low %v2066_v2, %v2070_v3  ;;  %v3557_v17 = vcombine.low %v2074_v6, %v2078_v7 }
 0x277   : > { %3830 = vperm.xlu0 %4381, %v3505_v9   ;;  %v3558_v20 = vcombine.low %v2082_v10, %v2086_v12  ;;  %v3565_v11 = vrot.slane %v3555_v13, %v5039_v51  ;;  %v1642_v21 = vrot.slane %v1078_v4, %v5015_v44  ;;  %v1646_v22 = vrot.slane %v1078_v4, %v5018_v45 }
 0x278   : > { %v3553_v23 = vrot.slane %v3539_v14, %v5039_v51  ;;  %v3572_v32 = vrot.slane %v3556_v16, %v5039_v51  ;;  %v3579_v24 = vrot.slane %v3557_v17, %v5039_v51  ;;  %v1650_v25 = vrot.slane %v1078_v4, %v5021_v46 }
 0x279   : > { %v3586_v26 = vrot.slane %v3558_v20, %v5039_v51  ;;  %v1654_v27 = vrot.slane %v1078_v4, %v5024_v47  ;;  %v1658_v28 = vrot.slane %v1078_v4, %v5027_v48  ;;  %v1662_v18 = vrot.slane %v1078_v4, %v5030_v49 }
 0x27a   : > { %v3554_v29 = vcombine.low %v3546_v15, %v3553_v23  ;;  %v3587_v30 = vcombine.low %v3565_v11, %v3572_v32  ;;  %v1666_v31 = vrot.slane %v1078_v4, %v5033_v0  ;;  %v1670_v33 = vrot.slane %v1078_v4, %v5036_v50  ;;  %v1126_v15 = vpop.xlane.xlu1 %1125 }
 0x27b   : > { %v3588_v34 = vcombine.low %v3579_v24, %v3586_v26  ;;  %v2918_v35 = vcombine.low %v1642_v21, %v1646_v22  ;;  %v2919_v36 = vcombine.low %v1650_v25, %v1654_v27  ;;  %v2920_v37 = vcombine.low %v1658_v28, %v1662_v18 }
 0x27c   : > { %3833 = vperm.xlu0 %4381, %v3554_v29   ;;  %v3595_v38 = vrot.slane %v3587_v30, %v5039_v51  ;;  %v2921_v40 = vcombine.low %v1666_v31, %v1670_v33  ;;  %v2090_v41 = vrot.slane %v1120_v19, %v5015_v44  ;;  %v2094_v43 = vrot.slane %v1120_v19, %v5018_v45 }
 0x27d   : > { %v3602_v52 = vrot.slane %v3588_v34, %v5039_v51  ;;  %v2928_v53 = vrot.slane %v2918_v35, %v5039_v51  ;;  %v2935_v55 = vrot.slane %v2919_v36, %v5039_v51  ;;  %v2942_v56 = vrot.slane %v2920_v37, %v5039_v51 }
 0x27e   : > { %v2949_v57 = vrot.slane %v2921_v40, %v5039_v51  ;;  %v2098_v58 = vrot.slane %v1120_v19, %v5021_v46  ;;  %v2102_v59 = vrot.slane %v1120_v19, %v5024_v47  ;;  %v2106_v60 = vrot.slane %v1120_v19, %v5027_v48 }
 0x27f   : > { %v3603_v61 = vcombine.low %v3595_v38, %v3602_v52  ;;  %v2950_v62 = vcombine.low %v2928_v53, %v2935_v55  ;;  %v2110_v63 = vrot.slane %v1120_v19, %v5030_v49  ;;  %v2114_v1 = vrot.slane %v1120_v19, %v5033_v0 }
 0x280   : > { %v2951_v2 = vcombine.low %v2942_v56, %v2949_v57  ;;  %v2118_v3 = vrot.slane %v1120_v19, %v5036_v50  ;;  %v3604_v4 = vcombine.low %v2090_v41, %v2094_v43  ;;  %v3605_v5 = vcombine.low %v2098_v58, %v2102_v59 }
 0x281   : > { %3836 = vperm.xlu0 %4381, %v3603_v61   ;;  %v2958_v54 = vrot.slane %v2950_v62, %v5039_v51  ;;  %v3606_v6 = vcombine.low %v2106_v60, %v2110_v63  ;;  %v2122_v7 = vrot.slane %v1123_v8, %v5015_v44  ;;  %v2126_v9 = vrot.slane %v1123_v8, %v5018_v45 }
 0x282   : > { %v2965_v10 = vrot.slane %v2951_v2, %v5039_v51  ;;  %v3607_v12 = vcombine.low %v2114_v1, %v2118_v3  ;;  %v3614_v13 = vrot.slane %v3604_v4, %v5039_v51  ;;  %v3621_v14 = vrot.slane %v3605_v5, %v5039_v51  ;;  %v3756_v4 = vpop.permute.xlu1 %3755 }
 0x283   : > { %v3628_v16 = vrot.slane %v3606_v6, %v5039_v51  ;;  %v2130_v17 = vrot.slane %v1123_v8, %v5021_v46  ;;  %v2134_v19 = vrot.slane %v1123_v8, %v5024_v47  ;;  %v2138_v20 = vrot.slane %v1123_v8, %v5027_v48 }
 0x284   : > { %v2966_v11 = vcombine.low %v2958_v54, %v2965_v10  ;;  %v3635_v21 = vrot.slane %v3607_v12, %v5039_v51  ;;  %v3636_v22 = vcombine.low %v3614_v13, %v3621_v14  ;;  %v2142_v23 = vrot.slane %v1123_v8, %v5030_v49  ;;  %v3753_v12 = vpop.permute.xlu0 %3752 }
 0x285   : > { %v2146_v32 = vrot.slane %v1123_v8, %v5033_v0  ;;  %v2150_v24 = vrot.slane %v1123_v8, %v5036_v50  ;;  %v3653_v25 = vcombine.low %v2122_v7, %v2126_v9  ;;  %v3654_v26 = vcombine.low %v2130_v17, %v2134_v19 }
 0x286   : > { %3797 = vperm.xlu1 %4382, %v2966_v11   ;;  %v3637_v27 = vcombine.low %v3628_v16, %v3635_v21  ;;  %v3644_v28 = vrot.slane %v3636_v22, %v5039_v51  ;;  %v3655_v18 = vcombine.low %v2138_v20, %v2142_v23  ;;  %v2154_v29 = vrot.slane %v1126_v15, %v5015_v44  ;;  %v3759_v5 = vpop.permute.xlu1 %3758 }
 0x287   : > { %v3656_v30 = vcombine.low %v2146_v32, %v2150_v24  ;;  %v3663_v31 = vrot.slane %v3653_v25, %v5039_v51  ;;  %v3670_v33 = vrot.slane %v3654_v26, %v5039_v51  ;;  %v2158_v34 = vrot.slane %v1126_v15, %v5018_v45 }
 0x288   : > { %v3651_v35 = vrot.slane %v3637_v27, %v5039_v51  ;;  %v3677_v36 = vrot.slane %v3655_v18, %v5039_v51  ;;  %v2162_v37 = vrot.slane %v1126_v15, %v5021_v46  ;;  %v2166_v38 = vrot.slane %v1126_v15, %v5024_v47 }
 0x289   : > { %v3684_v40 = vrot.slane %v3656_v30, %v5039_v51  ;;  %v3685_v41 = vcombine.low %v3663_v31, %v3670_v33  ;;  %v2170_v44 = vrot.slane %v1126_v15, %v5027_v48  ;;  %v2174_v43 = vrot.slane %v1126_v15, %v5030_v49 }
 0x28a   : > { %v3652_v8 = vcombine.low %v3644_v28, %v3651_v35  ;;  %v2178_v52 = vrot.slane %v1126_v15, %v5033_v0  ;;  %v2182_v45 = vrot.slane %v1126_v15, %v5036_v50  ;;  %v3702_v53 = vcombine.low %v2154_v29, %v2158_v34  ;;  %v3762_v54 = vpop.permute.xlu1 %3761 }
 0x28b   : > { %v3686_v55 = vcombine.low %v3677_v36, %v3684_v40  ;;  %v3693_v56 = vrot.slane %v3685_v41, %v5039_v51  ;;  %v3703_v57 = vcombine.low %v2162_v37, %v2166_v38  ;;  %v3704_v46 = vcombine.low %v2170_v44, %v2174_v43 }
 0x28c   : > { %3839 = vperm.xlu0 %4381, %v3652_v8   ;;  %v3705_v47 = vcombine.low %v2178_v52, %v2182_v45  ;;  %v3712_v58 = vrot.slane %v3702_v53, %v5039_v51  ;;  %v4503_v3 = vmov 0.0   ;;  %v5555_v24 = vand.u32 127, %v186_v39 }
 0x28d   : > { %v3700_v59 = vrot.slane %v3686_v55, %v5039_v51  ;;  %v3719_v48 = vrot.slane %v3703_v57, %v5039_v51  ;;  %v3726_v49 = vrot.slane %v3704_v46, %v5039_v51  ;;  %190 = vst.msk [vmem:[#allocation2] sm:$0x3] %vm5520_vm1, %v4503_v3 }
 0x28e   : > { %v3733_v0 = vrot.slane %v3705_v47, %v5039_v51  ;;  %v3765_v6 = vpop.permute.xlu1 %3764  ;;  %v3853_v25 = vadd.s32 4294967288, %v5555_v24  ;;  %v3860_v26 = vadd.s32 4294967280, %v5555_v24  ;;  %v3867_v27 = vadd.s32 4294967272, %v5555_v24 }
 0x28f   : > { %v3701_v60 = vcombine.low %v3693_v56, %v3700_v59  ;;  %v3734_v50 = vcombine.low %v3712_v58, %v3719_v48  ;;  %v3874_v28 = vadd.s32 4294967264, %v5555_v24  ;;  %v3881_v31 = vadd.s32 4294967256, %v5555_v24 }
 0x290   : > { %v3735_v61 = vcombine.low %v3726_v49, %v3733_v0  ;;  %v3856_v30 = vsub.s32 %v3853_v25, %v5012_v42  ;;  %v3863_v33 = vsub.s32 %v3860_v26, %v5012_v42  ;;  %v3888_v39 = vadd.s32 4294967248, %v5555_v24 }
 0x291   : > { %3842 = vperm.xlu0 %4381, %v3701_v60   ;;  %v3742_v62 = vrot.slane %v3734_v50, %v5039_v51  ;;  %v3851_v34 = vsub.s32 %v5555_v24, %v5012_v42  ;;  %v3870_v35 = vsub.s32 %v3867_v27, %v5012_v42  ;;  %v5571_v36 = vsub.s32 %v3874_v28, %v5012_v42 }
 0x292   : > { %v3749_v63 = vrot.slane %v3735_v61, %v5039_v51  ;;  %v3768_v7 = vpop.permute.xlu1 %3767  ;;  %v3895_v37 = vadd.s32 4294967240, %v5555_v24  ;;  %v3857_v40 = vrot.slane %v3756_v4, %v3856_v30  ;;  %v5575_v41 = vsub.s32 %v3881_v31, %v5012_v42 }
 0x293   : > { %v3864_v44 = vrot.slane %v3759_v5, %v3863_v33  ;;  %v5578_v43 = vsub.s32 %v3888_v39, %v5012_v42  ;;  %v3852_v52 = vrot.slane %v3753_v12, %v3851_v34  ;;  %v3871_v45 = vrot.slane %v3762_v54, %v3870_v35 }
 0x294   : > { %v3750_v1 = vcombine.low %v3742_v62, %v3749_v63  ;;  %v3878_v53 = vrot.slane %v3765_v6, %v5571_v36  ;;  %v5584_v55 = vsub.s32 %v3895_v37, %v5012_v42  ;;  %v3885_v46 = vrot.slane %v3768_v7, %v5575_v41 }
 0x295   : > { %v3859_v57 = vsel %vm3858_vm2, %v3857_v40, %v3852_v52  ;;  %v3902_v47 = vadd.s32 4294967232, %v5555_v24  ;;  %v3909_v49 = vadd.s32 4294967224, %v5555_v24  ;;  %v3916_v50 = vadd.s32 4294967216, %v5555_v24 }
 0x296   : > { %3845 = vperm.xlu0 %4381, %v3750_v1   ;;  %v5526_v9 = vpop.permute.xlu1 %3770  ;;  %v3866_v58 = vsel %vm3865_vm3, %v3864_v44, %v3859_v57  ;;  %v3923_v4 = vadd.s32 4294967208, %v5555_v24  ;;  %v3930_v7 = vadd.s32 4294967200, %v5555_v24  ;;  %v3937_v28 = vadd.s32 4294967192, %v5555_v24 }
 0x297   : > { %v3892_v59 = vrot.slane %v5526_v9, %v5578_v43  ;;  %v3873_v48 = vsel %vm3872_vm4, %v3871_v45, %v3866_v58  ;;  %v3905_v63 = vsub.s32 %v3902_v47, %v5012_v42  ;;  %v3912_v6 = vsub.s32 %v3909_v49, %v5012_v42 }
 0x298   : > { %v3880_v0 = vsel %vm3879_vm5, %v3878_v53, %v3873_v48  ;;  %v3919_v25 = vsub.s32 %v3916_v50, %v5012_v42  ;;  %v3944_v31 = vadd.s32 4294967184, %v5555_v24  ;;  %v3933_v39 = vsub.s32 %v3930_v7, %v5012_v42 }
 0x299   : > { %v3887_v62 = vsel %vm3886_vm6, %v3885_v46, %v3880_v0  ;;  %v3940_v44 = vsub.s32 %v3937_v28, %v5012_v42 }
 0x29a   : > { %v5528_v10 = vpop.permute.xlu1 %3773  ;;  %v3894_v3 = vsel %vm3893_vm7, %v3892_v59, %v3887_v62 }
 0x29b   : > { %v3899_v60 = vrot.slane %v5528_v10, %v5584_v55 }
 0x29d   : > { %v3901_v12 = vsel %vm3900_vm8, %v3899_v60, %v3894_v3 }
 0x29e   : > { %v5530_v13 = vpop.permute.xlu1 %3776 }
 0x2a2   : > { %v5534_v15 = vpop.permute.xlu1 %3779 }
 0x2a3   : > { %v3913_v40 = vrot.slane %v5534_v15, %v3912_v6 }
 0x2a7   : > { %v5540_v19 = vpop.permute.xlu1 %3782 }
 0x2ac   : > { %v5544_v11 = vpop.permute.xlu1 %3785 }
 0x2b1   : > { %v5548_v22 = vpop.permute.xlu1 %3788 }
 0x2b7   : > { %v5550_v23 = vpop.permute.xlu1 %3800 }
 0x2b8   : > { %v3961_v9 = vrot.slane %v5550_v23, %v3851_v34 }
 0x2bc   : > { %v3804_v18 = vpop.permute.xlu1 %3803 }
 0x2bd   : > { %v3965_v1 = vrot.slane %v3804_v18, %v3856_v30  ;;  %v3926_v18 = vsub.s32 %v3923_v4, %v5012_v42 }
 0x2bf   : > { %v3927_v45 = vrot.slane %v5544_v11, %v3926_v18 }
 0x2c1   : > { %v5532_v14 = vpop.permute.xlu0 %3806 }
 0x2c2   : > { %v3970_v5 = vrot.slane %v5532_v14, %v3863_v33  ;;  %v3966_v14 = vsel %vm3858_vm2, %v3965_v1, %v3961_v9  ;;  %v997_v9 = vld [vmem:[#allocation2] sm:$0x3] }
 0x2c4   : > { %v3971_v23 = vsel %vm3865_vm3, %v3970_v5, %v3966_v14 }
 0x2c6   : > { %v3810_v38 = vpop.permute.xlu1 %3809 }
 0x2c7   : > { %v3975_v10 = vrot.slane %v3810_v38, %v3870_v35  ;;  %v3951_v35 = vadd.s32 4294967176, %v5555_v24 }
 0x2c9   : > { %v3954_v53 = vsub.s32 %v3951_v35, %v5012_v42 }
 0x2cc   : > { %v5536_v16 = vpop.permute.xlu0 %3812 }
 0x2cd   : > { %v3980_v26 = vrot.slane %v5536_v16, %v5571_v36  ;;  %v3976_v16 = vsel %vm3872_vm4, %v3975_v10, %v3971_v23  ;;  %v3906_v36 = vrot.slane %v5530_v13, %v3905_v63  ;;  %v3947_v13 = vsub.s32 %v3944_v31, %v5012_v42 }
 0x2cf   : > { %v3981_v37 = vsel %vm3879_vm5, %v3980_v26, %v3976_v16 }
 0x2d1   : > { %v3816_v56 = vpop.permute.xlu1 %3815 }
 0x2d2   : > { %v3985_v27 = vrot.slane %v3816_v56, %v5575_v41  ;;  %v3908_v56 = vsel %vm3907_vm9, %v3906_v36, %v3901_v12 }
 0x2d4   : > { %v3986_v41 = vsel %vm3886_vm6, %v3985_v27, %v3981_v37 }
 0x2d6   : > { %v5538_v17 = vpop.permute.xlu0 %3818 }
 0x2d7   : > { %v3990_v30 = vrot.slane %v5538_v17, %v5578_v43 }
 0x2d9   : > { %v3991_v24 = vsel %vm3893_vm7, %v3990_v30, %v3986_v41 }
 0x2db   : > { %v5605_v54 = vpop.permute.xlu1 %3791 }
 0x2dc   : > { %v3941_v11 = vrot.slane %v5605_v54, %v3940_v44 }
 0x2e1   : > { %v5542_v20 = vpop.permute.xlu0 %3821 }
 0x2e2   : > { %v3995_v34 = vrot.slane %v5542_v20, %v5584_v55  ;;  %v3920_v20 = vrot.slane %v5540_v19, %v3919_v25 }
 0x2e6   : > { %v3795_v38 = vpop.permute.xlu1 %3794 }
 0x2e7   : > { %v3948_v42 = vrot.slane %v3795_v38, %v3947_v13 }
 0x2eb   : > { %v5546_v21 = vpop.permute.xlu0 %3824 }
 0x2ec   : > { %v4000_v17 = vrot.slane %v5546_v21, %v3905_v63  ;;  %v3996_v21 = vsel %vm3900_vm8, %v3995_v34, %v3991_v24 }
 0x2ee   : > { %v4001_v19 = vsel %vm3907_vm9, %v4000_v17, %v3996_v21 }
 0x2f0   : > { %v5552_v32 = vpop.permute.xlu0 %3827 }
 0x2f1   : > { %v4005_v43 = vrot.slane %v5552_v32, %v3912_v6  ;;  %v3934_v32 = vrot.slane %v5548_v22, %v3933_v39 }
 0x2f3   : > { %v4006_v47 = vsel %vm3914_vm10, %v4005_v43, %v4001_v19 }
 0x2f6   : > { %v5561_v29 = vpop.permute.xlu0 %3830 }
 0x2f7   : > { %v4010_v52 = vrot.slane %v5561_v29, %v3919_v25  ;;  %v3915_v29 = vsel %vm3914_vm10, %v3913_v40, %v3908_v56 }
 0x2f9   : > { %v4011_v59 = vsel %vm3921_vm11, %v4010_v52, %v4006_v47 }
 0x2fb   : > { %v5580_v8 = vpop.permute.xlu0 %3833 }
 0x2fc   : > { %v4015_v15 = vrot.slane %v5580_v8, %v3926_v18  ;;  %v3922_v8 = vsel %vm3921_vm11, %v3920_v20, %v3915_v29 }
 0x2fd   : > { %v3929_v22 = vsel %vm3928_vm12, %v3927_v45, %v3922_v8 }
 0x2fe   : > { %v4016_v49 = vsel %vm3928_vm12, %v4015_v15, %v4011_v59  ;;  %v3936_v60 = vsel %vm3935_vm13, %v3934_v32, %v3929_v22 }
 0x2ff   : > { %v3943_v62 = vsel %vm3942_vm14, %v3941_v11, %v3936_v60 }
 0x300   : > { %v5598_v61 = vpop.permute.xlu0 %3836  ;;  %v3950_v3 = vsel %vm3949_vm15, %v3948_v42, %v3943_v62 }
 0x301   : > { %v4020_v57 = vrot.slane %v5598_v61, %v3933_v39 }
 0x303   : > { %v4021_v50 = vsel %vm3935_vm13, %v4020_v57, %v4016_v49 }
 0x305   : > { %v3798_v46 = vpop.permute.xlu1 %3797 }
 0x306   : > { %v3955_v0 = vrot.slane %v3798_v46, %v3954_v53 }
 0x308   : > { %v3957_v5 = vsel %vm3956_vm0, %v3955_v0, %v3950_v3 }
 0x30b   : > { %v3840_v33 = vpop.permute.xlu0 %3839 }
 0x30c   : > { %v4025_v58 = vrot.slane %v3840_v33, %v3940_v44 }
 0x30e   : > { %v4026_v63 = vsel %vm3942_vm14, %v4025_v58, %v4021_v50 }
 0x310   : > { %v3843_v55 = vpop.permute.xlu0 %3842 }
 0x311   : > { %v4030_v48 = vrot.slane %v3843_v55, %v3947_v13 }
 0x313   : > { %v4031_v4 = vsel %vm3949_vm15, %v4030_v48, %v4026_v63 }
 0x315   : > { %v3846_v61 = vpop.permute.xlu0 %3845 }
 0x316   : > { %v4035_v1 = vrot.slane %v3846_v61, %v3954_v53 }
 0x318   : > { %v4036_v54 = vsel %vm3956_vm0, %v4035_v1, %v4031_v4 }
 0x319   : > { %v4037_v6 = vcombine.low %v3957_v5, %v4036_v54 }
 0x31b   : > { %v4044_v7 = vrot.slane %v4037_v6, %v5039_v51 }
 0x31d   : > { %v4051_v10 = vrot.slane %v4044_v7, %v5039_v51 }
 0x31f   : > { %v4053_v12 = vadd.f32 %v4051_v10, %v997_v9 }
 0x321   : > { %4058 = vst.msk [vmem:[#allocation2] sm:$0x3] %vm5520_vm1, %v4053_v12 }
 0x328   : > { %v4062_v25 = vld [vmem:[#allocation2] sm:$0x3] }
 0x329   : > { %v4063_v26 = vmul.f32 0.1, %v4062_v25 }
 0x32b   : > { %4064 = vst.msk [vmem:[%s178_s18] sm:$0x3] %vm5520_vm1, %v4063_v26 }
 0x32c   : > { %4426 = shalt.err (!%p4423_p5)
}
 0x32d   : > { %s4427_s3 = scalar_lea.hbm %s5666_s25, 32  ;;  %s4431_s30 = scalar_lea.hbm %s5719_s2, 64 }
 0x32e   : > { %p4428_p4 = scmp.ne.s32.totalorder %s5666_s25, %s4427_s3  ;;  %p4432_p12 = scmp.lt.u32.totalorder %s5666_s25, %s5719_s2 }
 0x32f   : > { %p4433_p1 = scmp.lt.u32.totalorder %s4431_s30, %s4427_s3  ;;  %p4435_p8 = scmp.lt.u32.totalorder %s4427_s3, %s5666_s25 }
 0x330   : > { %p4429_p7 = pnand %p4428_p4, %p5729_p9 }
 0x331   : > { %p4434_p3 = por %p4433_p1, %p4432_p12 }
 0x332   : > { %p4430_p10 = pneg %p4429_p7 }
 0x333   : > { %p4436_p11 = por %p4435_p8, %p4434_p3 }
 0x335   : > { %p4437_p0 = pnand %p4436_p11, %p4430_p10 }
 0x337   : > { %4440 = shalt.err (!%p4437_p0)
}
 0x338   : > { %4315 = dma.vmem_to_hbm [thread:$0]  (%p5729_p9), %s5668_s21, 32, %s5666_s25, %s4066_s26  }
 0x339 PF: > { %s4092_s5 = sand.u32 1, %s4475_s9   ;;  %p5730_p6 = scmp.ne.s32.totalorder %s5724_s24, 0 }
 0x33a   : > { %p5731_p13 = scmp.ge.s32.totalorder %s4495_s14, 2  ;;  %s4093_s6 = scalar_lea.sflag [#allocation5], %s4092_s5 }
 0x33c   : > { %p4322_p2 = pnand %p5731_p13, %p5730_p6 }
 0x33e   : > { %4470 = dma.done.wait (!%p4322_p2), %s4093_s6, 32  }
 0x33f   : > { %4472 = vsyncadd (!%p4322_p2), %s4093_s6, 4294967264  ;;  %s18_s14 = sadd.s32 1, %s4495_s14   ;;  %s5732_s9 = smov %s4479_s10 }
 0x340   : > { %p15_p5 = scmp.ge.s32.totalorder %s18_s14, 4   ;;  %s5733_s10 = smov %s4483_s11 }
 0x341   : > { %s5734_s11 = smov %s4576_s23  ;;  %s5735_s12 = smov %s4491_s13 }
 0x342   : > { %s5736_s13 = smov %s5738_s17  ;;  %17 = sbr.rel (!%p15_p5) target bundleno = 6 (0x6), region = 83 }
 0x349   :  { %4098 = vsyncpa [#allocation4], 1 }
 0x34a   :  { %4100 = vsyncpa [#allocation4 + $0x1], 1 }
 0x34b   :  { %4101 = vsyncpa [#allocation5], 1 }
 0x34c   :  { %4103 = vsyncpa [#allocation5 + $0x1], 1 }

</bundles_post_ra>
